<compile_context>
chip_gen: v6e
topology: v6e:2x2x1
jax: 0.10.0
libtpu: 0.0.40
codegen_flags: <defaults>
</compile_context>

<pallas_src>
import jax
import jax.numpy as jnp
from jax import lax
from jax.experimental import pallas as pl
from jax.experimental.pallas import tpu as pltpu


# -----------------------------------------------------------------------------
# Combined 2D DFT constants (forward + inverse, retained modes only)
# -----------------------------------------------------------------------------
def make_dft_constants(hp, wp, m1, m2, dtype=jnp.bfloat16):
    """F2  [Hp*Wp, 2*km]: x_flat @ F2 -> [Re | Im] of the km kept rfft2 modes.
    Finv [2*km, Hp*Wp]: [Re | Im] @ Finv -> irfft2 of the kept-mode spectrum.
    Kept modes: kh in {0..m1-1} U {Hp-m1..Hp-1}, kw in {0..m2-1} (torch order)."""
    assert m2 <= wp // 2 + 1, "m2 exceeds the rfft width"
    f32 = jnp.float32
    h = jnp.arange(hp, dtype=f32)
    w = jnp.arange(wp, dtype=f32)
    kh = jnp.concatenate([jnp.arange(m1, dtype=f32),
                          jnp.arange(hp - m1, hp, dtype=f32)])          # [2*m1]
    kw = jnp.arange(m2, dtype=f32)
    km = 2 * m1 * m2

    ph = 2.0 * jnp.pi * h[:, None] * kh[None, :] / hp                   # [Hp, 2m1]
    pw = 2.0 * jnp.pi * w[:, None] * kw[None, :] / wp                   # [Wp, m2]
    theta = (ph[:, None, :, None] + pw[None, :, None, :]).reshape(hp * wp, km)
    cos_t, sin_t = jnp.cos(theta), jnp.sin(theta)

    f2 = jnp.concatenate([cos_t, -sin_t], axis=1)                       # [s, 2km]

    # irfft Hermitian fold: kw=0 counted once, kw>=1 twice, Nyquist (if kept) once.
    coef = jnp.where(kw == 0, 1.0, 2.0).astype(f32)
    if wp % 2 == 0 and m2 == wp // 2 + 1:
        coef = coef.at[wp // 2].set(1.0)
    coef = jnp.tile(coef, 2 * m1)                                       # [km]
    finv = jnp.concatenate([coef[:, None] * cos_t.T,
                            -coef[:, None] * sin_t.T], axis=0) / (hp * wp)
    return f2.astype(dtype), finv.astype(dtype)                         # [2km, s]


# -----------------------------------------------------------------------------
# Kernel: one FourierBlock2D layer per grid step (layer axis = grid axis 1)
# -----------------------------------------------------------------------------
def _make_layer_kernel(cmax, s, km, n_layers, cin_chunk=8):
    f32, bf16 = jnp.float32, jnp.bfloat16

    def kernel(x_ref, f2_ref, finv_ref, wr_ref, wi_ref, wlin_ref, blin_ref,
               o_ref, h_scr):
        layer = pl.program_id(1)

        @pl.when(layer == 0)
        def _():
            h_scr[...] = x_ref[0]            # fresh (channel-padded) input

        h = h_scr[...]                       # [Cmax, Hp*Wp] f32 activation
        h_b = h.astype(bf16)

        # -- forward combined 2D DFT of the kept modes: one lane-dense matmul --
        xf = jnp.dot(h_b, f2_ref[...], preferred_element_type=f32)  # [Cmax, 2km]
        xr, xi = xf[:, :km], xf[:, km:]

        # -- per-mode complex channel mixing (VPU, f32), chunked over Cin ------
        o_r = jnp.zeros((cmax, km), f32)
        o_i = jnp.zeros((cmax, km), f32)
        for c0 in range(0, cmax, cin_chunk):
            c1 = min(c0 + cin_chunk, cmax)
            xrc, xic = xr[c0:c1, None, :], xi[c0:c1, None, :]
            wrc, wic = wr_ref[0, c0:c1], wi_ref[0, c0:c1]        # [cc, Cmax, km]
            o_r = o_r + jnp.sum(xrc * wrc - xic * wic, axis=0)
            o_i = o_i + jnp.sum(xrc * wic + xic * wrc, axis=0)
        # TODO(synk): at large Cin switch this to lax.fori_loop and lane-pad km.

        # -- inverse combined 2D DFT back to the padded grid: one matmul -------
        y_hat = jnp.concatenate([o_r, o_i], axis=1).astype(bf16)     # [Cmax, 2km]
        y = jnp.dot(y_hat, finv_ref[...], preferred_element_type=f32)  # [Cmax, s]

        # -- 1x1-conv bypass + bias (MXU, lane dim = Hp*Wp) --------------------
        y = y + jnp.dot(wlin_ref[0], h_b, preferred_element_type=f32)
        y = y + blin_ref[0]

        # Tanh on every layer but the last (Identity there), matching torch.
        y = jnp.where(layer < n_layers - 1, jnp.tanh(y), y)

        h_scr[...] = y
        o_ref[0] = y

    return kernel


# -----------------------------------------------------------------------------
# Host wrapper: permute/pad/crop + one pallas_call over grid (batch, layers)
# -----------------------------------------------------------------------------
def build_forward(sx, sy, channels, n_modes, padding, single_buffer_consts=True):
    m1, m2 = n_modes
    hp, wp = sx + padding, sy + padding
    s = hp * wp
    km = 2 * m1 * m2
    cmax = max(channels)
    c_in, c_out = channels[0], channels[-1]
    n_layers = len(channels) - 1

    kernel = _make_layer_kernel(cmax, s, km, n_layers)

    # Explicit VMEM budget: activations (in/out/scratch) + constants +
    # double-buffered per-layer weights, with generous headroom.
    act_b = cmax * s * 4
    const_b = 2 * (s * 2 * km * 2) * (1 if single_buffer_consts else 2)
    w_b = 2 * (2 * cmax * cmax * km * 4 + cmax * cmax * 2 + cmax * 4)
    vmem_limit = min(2 * (5 * act_b + const_b + w_b) + (16 << 20), 112 << 20)

    @jax.jit
    def forward(x, f2, finv, wr, wi, wlin, blin):
        b = x.shape[0]
        h = jnp.transpose(x, (0, 3, 1, 2))                       # NCHW
        h = jnp.pad(h, ((0, 0), (0, 0), (0, padding), (0, padding)))
        h = h.reshape(b, c_in, s)                                # lane-dense
        h = jnp.pad(h, ((0, 0), (0, cmax - c_in), (0, 0)))       # channel pad
        # TODO(synk): fuse this pad and the final crop/transpose into the kernel
        # to drop the extra HBM activation passes.

        const_kw = dict(pipeline_mode=pl.Buffered(1)) if single_buffer_consts else {}
        f2_spec = pl.BlockSpec((s, 2 * km), lambda bi, l: (0, 0), **const_kw)
        fi_spec = pl.BlockSpec((2 * km, s), lambda bi, l: (0, 0), **const_kw)

        out = pl.pallas_call(
            kernel,
            out_shape=jax.ShapeDtypeStruct((b, cmax, s), jnp.float32),
            grid=(b, n_layers),
            in_specs=[
                pl.BlockSpec((1, cmax, s), lambda bi, l: (bi, 0, 0)),
                f2_spec,
                fi_spec,
                pl.BlockSpec((1, cmax, cmax, km), lambda bi, l: (l, 0, 0, 0)),
                pl.BlockSpec((1, cmax, cmax, km), lambda bi, l: (l, 0, 0, 0)),
                pl.BlockSpec((1, cmax, cmax), lambda bi, l: (l, 0, 0)),
                pl.BlockSpec((1, cmax, 1), lambda bi, l: (l, 0, 0)),
            ],
            out_specs=pl.BlockSpec((1, cmax, s), lambda bi, l: (bi, 0, 0)),
            scratch_shapes=[pltpu.VMEM((cmax, s), jnp.float32)],
            compiler_params=pltpu.CompilerParams(
                dimension_semantics=("parallel", "arbitrary"),
                vmem_limit_bytes=vmem_limit),
        )(h, f2, finv, wr, wi, wlin, blin)

        out = out.reshape(b, cmax, hp, wp)[:, :c_out, :sx, :sy]
        return jnp.transpose(out, (0, 2, 3, 1))                  # channels-last

    return forward


# -----------------------------------------------------------------------------
# Parameters (shapes follow FourierBlock2D / SpectralConv2D) + kernel packing
# -----------------------------------------------------------------------------
def init_params(key, layer_sizes, n_modes):
    m1, m2 = n_modes
    params = []
    for i in range(len(layer_sizes) - 1):
        ci, co = layer_sizes[i], layer_sizes[i + 1]
        key, *ks = jax.random.split(key, 7)
        scale = 1.0 / (ci * co)
        w1r = scale * jax.random.uniform(ks[0], (ci, co, m1, m2), jnp.float32)
        w1i = scale * jax.random.uniform(ks[1], (ci, co, m1, m2), jnp.float32)
        w2r = scale * jax.random.uniform(ks[2], (ci, co, m1, m2), jnp.float32)
        w2i = scale * jax.random.uniform(ks[3], (ci, co, m1, m2), jnp.float32)
        wlin = jax.random.normal(ks[4], (co, ci), jnp.float32) / jnp.sqrt(ci)
        blin = 0.1 * jax.random.normal(ks[5], (co,), jnp.float32)
        params.append(dict(w1r=w1r, w1i=w1i, w2r=w2r, w2i=w2i,
                           wlin=wlin, blin=blin,
                           w1c=lax.complex(w1r, w1i), w2c=lax.complex(w2r, w2i)))
    return params


def pack_params(params, channels, n_modes):
    """Stack per-layer weights into uniform [L, Cmax, ...] arrays.  Zero-padded
    channels are inert: padded wlin rows / bias entries / spectral weights are
    zero, so padded activation channels stay exactly zero through every layer."""
    m1, m2 = n_modes
    km = 2 * m1 * m2
    cmax = max(channels)
    wrs, wis, wls, bls = [], [], [], []
    for i, lp in enumerate(params):
        ci, co = channels[i], channels[i + 1]
        wr = jnp.concatenate([lp["w1r"], lp["w2r"]], axis=2).reshape(ci, co, km)
        wi = jnp.concatenate([lp["w1i"], lp["w2i"]], axis=2).reshape(ci, co, km)
        wrs.append(jnp.pad(wr, ((0, cmax - ci), (0, cmax - co), (0, 0))))
        wis.append(jnp.pad(wi, ((0, cmax - ci), (0, cmax - co), (0, 0))))
        wls.append(jnp.pad(lp["wlin"], ((0, cmax - co), (0, cmax - ci))))
        bls.append(jnp.pad(lp["blin"], ((0, cmax - co),)).reshape(cmax, 1))
    return (jnp.stack(wrs), jnp.stack(wis),
            jnp.stack(wls).astype(jnp.bfloat16), jnp.stack(bls))


# -----------------------------------------------------------------------------
# Pure-JAX reference (jnp.fft, HIGHEST precision) for validation
# -----------------------------------------------------------------------------
def _spectral_conv2d_ref(x, w1c, w2c, m1, m2):
    bsz, cin, hp, wp = x.shape
    cout = w1c.shape[1]
    hi = lax.Precision.HIGHEST
    x_ft = jnp.fft.rfft2(x)
    out_ft = jnp.zeros((bsz, cout, hp, wp // 2 + 1), dtype=jnp.complex64)
    out_ft = out_ft.at[:, :, :m1, :m2].set(
        jnp.einsum("bixy,ioxy->boxy", x_ft[:, :, :m1, :m2], w1c, precision=hi))
    out_ft = out_ft.at[:, :, hp - m1:, :m2].set(
        jnp.einsum("bixy,ioxy->boxy", x_ft[:, :, hp - m1:, :m2], w2c, precision=hi))
    return jnp.fft.irfft2(out_ft, s=(hp, wp))


def forward_ref(x, params, n_modes, padding):
    m1, m2 = n_modes
    b, sx, sy, _ = x.shape
    hi = lax.Precision.HIGHEST
    h = jnp.transpose(x, (0, 3, 1, 2))
    h = jnp.pad(h, ((0, 0), (0, 0), (0, padding), (0, padding)))
    n = len(params)
    for i, lp in enumerate(params):
        spec = _spectral_conv2d_ref(h, lp["w1c"], lp["w2c"], m1, m2)
        lin = (jnp.einsum("oi,bihw->bohw", lp["wlin"], h, precision=hi)
               + lp["blin"][None, :, None, None])
        h = spec + lin
        if i < n - 1:
            h = jnp.tanh(h)
    h = h[:, :, :sx, :sy]
    return jnp.transpose(h, (0, 2, 3, 1))


if __name__ == "__main__":
    B, X, Y = 2, 16, 16
    input_numb_fields = 4
    inner_size, n_layers = 8, 2
    n_modes = (4, 4)
    padding = 8

    channels = [input_numb_fields] + [inner_size] * n_layers   # 4 -> 8 -> 8
    key = jax.random.PRNGKey(0)
    kx, kp = jax.random.split(key)
    x = jax.random.normal(kx, (B, X, Y, input_numb_fields), jnp.float32)
    params = init_params(kp, channels, n_modes)

    # Constants built once and reused (reviewer item: no per-call rebuild).
    f2, finv = make_dft_constants(X + padding, Y + padding, *n_modes)
    wr, wi, wlin, blin = pack_params(params, channels, n_modes)
    args = (x, f2, finv, wr, wi, wlin, blin)

    try:
        fwd = build_forward(X, Y, channels, n_modes, padding,
                            single_buffer_consts=True)
        out = jax.block_until_ready(fwd(*args))
    except Exception:
        # Fallback if this jax/libtpu build rejects pipeline_mode=pl.Buffered(1).
        fwd = build_forward(X, Y, channels, n_modes, padding,
                            single_buffer_consts=False)
        out = jax.block_until_ready(fwd(*args))

    assert out.shape == (B, X, Y, inner_size), out.shape

    ref = jax.block_until_ready(forward_ref(x, params, n_modes, padding))
    max_abs = float(jnp.max(jnp.abs(out - ref)))
    rel_l2 = float(jnp.linalg.norm(out - ref) /
                   (jnp.linalg.norm(ref) + 1e-12))
    # Tolerances reflect single-pass bf16 MXU operands (f32 accumulation) vs a
    # HIGHEST-precision f32 jnp.fft reference, per the perf-review guidance.
    assert max_abs < 5e-2 and rel_l2 < 2e-2, (max_abs, rel_l2)
    print("KERNEL_OK")
</pallas_src>

<mosaic_0001>
module attributes {stable_mosaic.version = 11 : i64} {
  func.func @kernel(%arg0: i32, %arg1: i32, %arg2: memref<1x8x576xf32, #tpu.memory_space<vmem>>, %arg3: memref<576x64xbf16, #tpu.memory_space<vmem>>, %arg4: memref<64x576xbf16, #tpu.memory_space<vmem>>, %arg5: memref<1x8x8x32xf32, #tpu.memory_space<vmem>>, %arg6: memref<1x8x8x32xf32, #tpu.memory_space<vmem>>, %arg7: memref<1x8x8xbf16, #tpu.memory_space<vmem>>, %arg8: memref<1x8x1xf32, #tpu.memory_space<vmem>>, %arg9: memref<1x8x576xf32, #tpu.memory_space<vmem>>, %arg10: memref<8x576xf32, #tpu.memory_space<vmem>>) attributes {dimension_semantics = [#tpu.dimension_semantics<parallel>, #tpu.dimension_semantics<arbitrary>], iteration_bounds = array<i64: 2, 2>, scalar_prefetch = 0 : i64, scratch_operands = 1 : i64, tpu.core_type = #tpu.core_type<tc>, window_params = [{transform_indices = @transform_0, window_bounds = array<i64: 1, 8, 576>}, {pipeline_mode = #tpu.pipeline_mode<synchronous>, transform_indices = @transform_1, window_bounds = array<i64: 576, 64>}, {pipeline_mode = #tpu.pipeline_mode<synchronous>, transform_indices = @transform_2, window_bounds = array<i64: 64, 576>}, {transform_indices = @transform_3, window_bounds = array<i64: 1, 8, 8, 32>}, {transform_indices = @transform_4, window_bounds = array<i64: 1, 8, 8, 32>}, {transform_indices = @transform_5, window_bounds = array<i64: 1, 8, 8>}, {transform_indices = @transform_6, window_bounds = array<i64: 1, 8, 1>}, {transform_indices = @transform_7, window_bounds = array<i64: 1, 8, 576>}]} {
    %c0_i32 = arith.constant 0 : i32
    %0 = arith.cmpi eq, %arg1, %c0_i32 : i32
    %1 = arith.extui %0 : i1 to i32
    %c0_i32_0 = arith.constant 0 : i32
    %2 = arith.cmpi ne, %1, %c0_i32_0 : i32
    scf.if %2 {
      %c0_31 = arith.constant 0 : index
      %c0_32 = arith.constant 0 : index
      %c0_33 = arith.constant 0 : index
      %50 = vector.load %arg2[%c0_31, %c0_32, %c0_33] : memref<1x8x576xf32, #tpu.memory_space<vmem>>, vector<1x8x576xf32>
      %51 = vector.shape_cast %50 : vector<1x8x576xf32> to vector<8x576xf32>
      %c0_34 = arith.constant 0 : index
      %c0_35 = arith.constant 0 : index
      %52 = vector.load %arg10[%c0_34, %c0_35] : memref<8x576xf32, #tpu.memory_space<vmem>>, vector<8x576xf32>
      tpu.vector_store %arg10[%c0_34, %c0_35], %51 {strides = array<i32>} : memref<8x576xf32, #tpu.memory_space<vmem>>, vector<8x576xf32>,
    } else {
    }
    %c0 = arith.constant 0 : index
    %c0_1 = arith.constant 0 : index
    %3 = vector.load %arg10[%c0, %c0_1] : memref<8x576xf32, #tpu.memory_space<vmem>>, vector<8x576xf32>
    %4 = arith.truncf %3 : vector<8x576xf32> to vector<8x576xbf16>
    %c0_2 = arith.constant 0 : index
    %c0_3 = arith.constant 0 : index
    %5 = vector.load %arg3[%c0_2, %c0_3] : memref<576x64xbf16, #tpu.memory_space<vmem>>, vector<576x64xbf16>
    %cst = arith.constant dense<0.000000e+00> : vector<8x64xf32>
    %6 = tpu.matmul %4, %5, %cst {dimension_numbers = #tpu.dot_dimension_numbers<[1], [0], [0], [1], [0, 0, 1, 1], [], []>} : vector<8x576xbf16>, vector<576x64xbf16>, vector<8x64xf32> -> vector<8x64xf32>
    %7 = vector.extract_strided_slice %6 {offsets = [0, 0], sizes = [8, 32], strides = [1, 1]} : vector<8x64xf32> to vector<8x32xf32>
    %8 = vector.extract_strided_slice %6 {offsets = [0, 32], sizes = [8, 32], strides = [1, 1]} : vector<8x64xf32> to vector<8x32xf32>
    %cst_4 = arith.constant 0.000000e+00 : f32
    %9 = vector.broadcast %cst_4 : f32 to vector<8x32xf32>
    %cst_5 = arith.constant 0.000000e+00 : f32
    %10 = vector.broadcast %cst_5 : f32 to vector<8x32xf32>
    %11 = vector.shape_cast %7 : vector<8x32xf32> to vector<8x1x32xf32>
    %12 = vector.shape_cast %8 : vector<8x32xf32> to vector<8x1x32xf32>
    %c0_6 = arith.constant 0 : index
    %c0_7 = arith.constant 0 : index
    %c0_8 = arith.constant 0 : index
    %c0_9 = arith.constant 0 : index
    %13 = vector.load %arg5[%c0_6, %c0_7, %c0_8, %c0_9] : memref<1x8x8x32xf32, #tpu.memory_space<vmem>>, vector<1x8x8x32xf32>
    %14 = vector.shape_cast %13 : vector<1x8x8x32xf32> to vector<8x8x32xf32>
    %c0_10 = arith.constant 0 : index
    %c0_11 = arith.constant 0 : index
    %c0_12 = arith.constant 0 : index
    %c0_13 = arith.constant 0 : index
    %15 = vector.load %arg6[%c0_10, %c0_11, %c0_12, %c0_13] : memref<1x8x8x32xf32, #tpu.memory_space<vmem>>, vector<1x8x8x32xf32>
    %16 = vector.shape_cast %15 : vector<1x8x8x32xf32> to vector<8x8x32xf32>
    %17 = vector.broadcast %11 : vector<8x1x32xf32> to vector<8x8x32xf32>
    %18 = arith.mulf %17, %14 : vector<8x8x32xf32>
    %19 = vector.broadcast %12 : vector<8x1x32xf32> to vector<8x8x32xf32>
    %20 = arith.mulf %19, %16 : vector<8x8x32xf32>
    %21 = arith.subf %18, %20 : vector<8x8x32xf32>
    %cst_14 = arith.constant dense<0.000000e+00> : vector<8x32xf32>
    %22 = vector.multi_reduction <add>, %21, %cst_14 [0] : vector<8x8x32xf32> to vector<8x32xf32>
    %23 = arith.addf %9, %22 : vector<8x32xf32>
    %24 = vector.broadcast %11 : vector<8x1x32xf32> to vector<8x8x32xf32>
    %25 = arith.mulf %24, %16 : vector<8x8x32xf32>
    %26 = vector.broadcast %12 : vector<8x1x32xf32> to vector<8x8x32xf32>
    %27 = arith.mulf %26, %14 : vector<8x8x32xf32>
    %28 = arith.addf %25, %27 : vector<8x8x32xf32>
    %cst_15 = arith.constant dense<0.000000e+00> : vector<8x32xf32>
    %29 = vector.multi_reduction <add>, %28, %cst_15 [0] : vector<8x8x32xf32> to vector<8x32xf32>
    %30 = arith.addf %10, %29 : vector<8x32xf32>
    %31 = tpu.concatenate %23, %30 in 1 : vector<8x32xf32>, vector<8x32xf32> -> vector<8x64xf32>
    %32 = arith.truncf %31 : vector<8x64xf32> to vector<8x64xbf16>
    %c0_16 = arith.constant 0 : index
    %c0_17 = arith.constant 0 : index
    %33 = vector.load %arg4[%c0_16, %c0_17] : memref<64x576xbf16, #tpu.memory_space<vmem>>, vector<64x576xbf16>
    %cst_18 = arith.constant dense<0.000000e+00> : vector<8x576xf32>
    %34 = tpu.matmul %32, %33, %cst_18 {dimension_numbers = #tpu.dot_dimension_numbers<[1], [0], [0], [1], [0, 0, 1, 1], [], []>} : vector<8x64xbf16>, vector<64x576xbf16>, vector<8x576xf32> -> vector<8x576xf32>
    %c0_19 = arith.constant 0 : index
    %c0_20 = arith.constant 0 : index
    %c0_21 = arith.constant 0 : index
    %35 = vector.load %arg7[%c0_19, %c0_20, %c0_21] : memref<1x8x8xbf16, #tpu.memory_space<vmem>>, vector<1x8x8xbf16>
    %36 = vector.shape_cast %35 : vector<1x8x8xbf16> to vector<8x8xbf16>
    %cst_22 = arith.constant dense<0.000000e+00> : vector<8x576xf32>
    %37 = tpu.matmul %36, %4, %cst_22 {dimension_numbers = #tpu.dot_dimension_numbers<[1], [0], [0], [1], [0, 0, 1, 1], [], []>} : vector<8x8xbf16>, vector<8x576xbf16>, vector<8x576xf32> -> vector<8x576xf32>
    %38 = arith.addf %34, %37 : vector<8x576xf32>
    %c0_23 = arith.constant 0 : index
    %c0_24 = arith.constant 0 : index
    %c0_25 = arith.constant 0 : index
    %39 = vector.load %arg8[%c0_23, %c0_24, %c0_25] : memref<1x8x1xf32, #tpu.memory_space<vmem>>, vector<1x8x1xf32>
    %40 = vector.shape_cast %39 : vector<1x8x1xf32> to vector<8x1xf32>
    %41 = vector.broadcast %40 : vector<8x1xf32> to vector<8x576xf32>
    %42 = arith.addf %38, %41 : vector<8x576xf32>
    %c1_i32 = arith.constant 1 : i32
    %43 = arith.cmpi slt, %arg1, %c1_i32 : i32
    %44 = math.tanh %42 : vector<8x576xf32>
    %45 = arith.select %43, %44, %42 : vector<8x576xf32>
    %c0_26 = arith.constant 0 : index
    %c0_27 = arith.constant 0 : index
    %46 = vector.load %arg10[%c0_26, %c0_27] : memref<8x576xf32, #tpu.memory_space<vmem>>, vector<8x576xf32>
    tpu.vector_store %arg10[%c0_26, %c0_27], %45 {strides = array<i32>} : memref<8x576xf32, #tpu.memory_space<vmem>>, vector<8x576xf32>,
    %c0_28 = arith.constant 0 : index
    %c0_29 = arith.constant 0 : index
    %c0_30 = arith.constant 0 : index
    %47 = vector.load %arg9[%c0_28, %c0_29, %c0_30] : memref<1x8x576xf32, #tpu.memory_space<vmem>>, vector<1x8x576xf32>
    %48 = vector.shape_cast %47 : vector<1x8x576xf32> to vector<8x576xf32>
    %49 = vector.shape_cast %45 : vector<8x576xf32> to vector<1x8x576xf32>
    tpu.vector_store %arg9[%c0_28, %c0_29, %c0_30], %49 {strides = array<i32>} : memref<1x8x576xf32, #tpu.memory_space<vmem>>, vector<1x8x576xf32>,
    return
  }
  func.func @transform_0(%arg0: i32, %arg1: i32) -> (i32, i32, i32) {
    %c0_i32 = arith.constant 0 : i32
    %c0_i32_0 = arith.constant 0 : i32
    %c0_i32_1 = arith.constant 0 : i32
    return %arg0, %c0_i32, %c0_i32_0 : i32, i32, i32
  }
  func.func @transform_1(%arg0: i32, %arg1: i32) -> (i32, i32) {
    %c0_i32 = arith.constant 0 : i32
    %c0_i32_0 = arith.constant 0 : i32
    %c0_i32_1 = arith.constant 0 : i32
    return %c0_i32, %c0_i32_0 : i32, i32
  }
  func.func @transform_2(%arg0: i32, %arg1: i32) -> (i32, i32) {
    %c0_i32 = arith.constant 0 : i32
    %c0_i32_0 = arith.constant 0 : i32
    %c0_i32_1 = arith.constant 0 : i32
    return %c0_i32, %c0_i32_0 : i32, i32
  }
  func.func @transform_3(%arg0: i32, %arg1: i32) -> (i32, i32, i32, i32) {
    %c0_i32 = arith.constant 0 : i32
    %c0_i32_0 = arith.constant 0 : i32
    %c0_i32_1 = arith.constant 0 : i32
    %c0_i32_2 = arith.constant 0 : i32
    return %arg1, %c0_i32, %c0_i32_0, %c0_i32_1 : i32, i32, i32, i32
  }
  func.func @transform_4(%arg0: i32, %arg1: i32) -> (i32, i32, i32, i32) {
    %c0_i32 = arith.constant 0 : i32
    %c0_i32_0 = arith.constant 0 : i32
    %c0_i32_1 = arith.constant 0 : i32
    %c0_i32_2 = arith.constant 0 : i32
    return %arg1, %c0_i32, %c0_i32_0, %c0_i32_1 : i32, i32, i32, i32
  }
  func.func @transform_5(%arg0: i32, %arg1: i32) -> (i32, i32, i32) {
    %c0_i32 = arith.constant 0 : i32
    %c0_i32_0 = arith.constant 0 : i32
    %c0_i32_1 = arith.constant 0 : i32
    return %arg1, %c0_i32, %c0_i32_0 : i32, i32, i32
  }
  func.func @transform_6(%arg0: i32, %arg1: i32) -> (i32, i32, i32) {
    %c0_i32 = arith.constant 0 : i32
    %c0_i32_0 = arith.constant 0 : i32
    %c0_i32_1 = arith.constant 0 : i32
    return %arg1, %c0_i32, %c0_i32_0 : i32, i32, i32
  }
  func.func @transform_7(%arg0: i32, %arg1: i32) -> (i32, i32, i32) {
    %c0_i32 = arith.constant 0 : i32
    %c0_i32_0 = arith.constant 0 : i32
    %c0_i32_1 = arith.constant 0 : i32
    return %arg0, %c0_i32, %c0_i32_0 : i32, i32, i32
  }
}

module attributes {stable_mosaic.version = 11 : i64} {
  func.func @kernel(%arg0: i32, %arg1: i32, %arg2: memref<1x8x576xf32, #tpu.memory_space<vmem>>, %arg3: memref<576x64xbf16, #tpu.memory_space<vmem>>, %arg4: memref<64x576xbf16, #tpu.memory_space<vmem>>, %arg5: memref<1x8x8x32xf32, #tpu.memory_space<vmem>>, %arg6: memref<1x8x8x32xf32, #tpu.memory_space<vmem>>, %arg7: memref<1x8x8xbf16, #tpu.memory_space<vmem>>, %arg8: memref<1x8x1xf32, #tpu.memory_space<vmem>>, %arg9: memref<1x8x576xf32, #tpu.memory_space<vmem>>, %arg10: memref<8x576xf32, #tpu.memory_space<vmem>>) attributes {dimension_semantics = [#tpu.dimension_semantics<parallel>, #tpu.dimension_semantics<arbitrary>], iteration_bounds = array<i64: 2, 2>, scalar_prefetch = 0 : i64, scratch_operands = 1 : i64, tpu.core_type = #tpu.core_type<tc>, window_params = [{transform_indices = @transform_0, window_bounds = array<i64: 1, 8, 576>}, {pipeline_mode = #tpu.pipeline_mode<synchronous>, transform_indices = @transform_1, window_bounds = array<i64: 576, 64>}, {pipeline_mode = #tpu.pipeline_mode<synchronous>, transform_indices = @transform_2, window_bounds = array<i64: 64, 576>}, {transform_indices = @transform_3, window_bounds = array<i64: 1, 8, 8, 32>}, {transform_indices = @transform_4, window_bounds = array<i64: 1, 8, 8, 32>}, {transform_indices = @transform_5, window_bounds = array<i64: 1, 8, 8>}, {transform_indices = @transform_6, window_bounds = array<i64: 1, 8, 1>}, {transform_indices = @transform_7, window_bounds = array<i64: 1, 8, 576>}]} {
    %c0_i32 = arith.constant 0 : i32
    %0 = arith.cmpi eq, %arg1, %c0_i32 : i32
    %1 = arith.extui %0 : i1 to i32
    %c0_i32_0 = arith.constant 0 : i32
    %2 = arith.cmpi ne, %1, %c0_i32_0 : i32
    scf.if %2 {
      %c0_31 = arith.constant 0 : index
      %c0_32 = arith.constant 0 : index
      %c0_33 = arith.constant 0 : index
      %50 = vector.load %arg2[%c0_31, %c0_32, %c0_33] : memref<1x8x576xf32, #tpu.memory_space<vmem>>, vector<1x8x576xf32>
      %51 = vector.shape_cast %50 : vector<1x8x576xf32> to vector<8x576xf32>
      %c0_34 = arith.constant 0 : index
      %c0_35 = arith.constant 0 : index
      %52 = vector.load %arg10[%c0_34, %c0_35] : memref<8x576xf32, #tpu.memory_space<vmem>>, vector<8x576xf32>
      tpu.vector_store %arg10[%c0_34, %c0_35], %51 {strides = array<i32>} : memref<8x576xf32, #tpu.memory_space<vmem>>, vector<8x576xf32>,
    } else {
    }
    %c0 = arith.constant 0 : index
    %c0_1 = arith.constant 0 : index
    %3 = vector.load %arg10[%c0, %c0_1] : memref<8x576xf32, #tpu.memory_space<vmem>>, vector<8x576xf32>
    %4 = arith.truncf %3 : vector<8x576xf32> to vector<8x576xbf16>
    %c0_2 = arith.constant 0 : index
    %c0_3 = arith.constant 0 : index
    %5 = vector.load %arg3[%c0_2, %c0_3] : memref<576x64xbf16, #tpu.memory_space<vmem>>, vector<576x64xbf16>
    %cst = arith.constant dense<0.000000e+00> : vector<8x64xf32>
    %6 = tpu.matmul %4, %5, %cst {dimension_numbers = #tpu.dot_dimension_numbers<[1], [0], [0], [1], [0, 0, 1, 1], [], []>} : vector<8x576xbf16>, vector<576x64xbf16>, vector<8x64xf32> -> vector<8x64xf32>
    %7 = vector.extract_strided_slice %6 {offsets = [0, 0], sizes = [8, 32], strides = [1, 1]} : vector<8x64xf32> to vector<8x32xf32>
    %8 = vector.extract_strided_slice %6 {offsets = [0, 32], sizes = [8, 32], strides = [1, 1]} : vector<8x64xf32> to vector<8x32xf32>
    %cst_4 = arith.constant 0.000000e+00 : f32
    %9 = vector.broadcast %cst_4 : f32 to vector<8x32xf32>
    %cst_5 = arith.constant 0.000000e+00 : f32
    %10 = vector.broadcast %cst_5 : f32 to vector<8x32xf32>
    %11 = vector.shape_cast %7 : vector<8x32xf32> to vector<8x1x32xf32>
    %12 = vector.shape_cast %8 : vector<8x32xf32> to vector<8x1x32xf32>
    %c0_6 = arith.constant 0 : index
    %c0_7 = arith.constant 0 : index
    %c0_8 = arith.constant 0 : index
    %c0_9 = arith.constant 0 : index
    %13 = vector.load %arg5[%c0_6, %c0_7, %c0_8, %c0_9] : memref<1x8x8x32xf32, #tpu.memory_space<vmem>>, vector<1x8x8x32xf32>
    %14 = vector.shape_cast %13 : vector<1x8x8x32xf32> to vector<8x8x32xf32>
    %c0_10 = arith.constant 0 : index
    %c0_11 = arith.constant 0 : index
    %c0_12 = arith.constant 0 : index
    %c0_13 = arith.constant 0 : index
    %15 = vector.load %arg6[%c0_10, %c0_11, %c0_12, %c0_13] : memref<1x8x8x32xf32, #tpu.memory_space<vmem>>, vector<1x8x8x32xf32>
    %16 = vector.shape_cast %15 : vector<1x8x8x32xf32> to vector<8x8x32xf32>
    %17 = vector.broadcast %11 : vector<8x1x32xf32> to vector<8x8x32xf32>
    %18 = arith.mulf %17, %14 : vector<8x8x32xf32>
    %19 = vector.broadcast %12 : vector<8x1x32xf32> to vector<8x8x32xf32>
    %20 = arith.mulf %19, %16 : vector<8x8x32xf32>
    %21 = arith.subf %18, %20 : vector<8x8x32xf32>
    %cst_14 = arith.constant dense<0.000000e+00> : vector<8x32xf32>
    %22 = vector.multi_reduction <add>, %21, %cst_14 [0] : vector<8x8x32xf32> to vector<8x32xf32>
    %23 = arith.addf %9, %22 : vector<8x32xf32>
    %24 = vector.broadcast %11 : vector<8x1x32xf32> to vector<8x8x32xf32>
    %25 = arith.mulf %24, %16 : vector<8x8x32xf32>
    %26 = vector.broadcast %12 : vector<8x1x32xf32> to vector<8x8x32xf32>
    %27 = arith.mulf %26, %14 : vector<8x8x32xf32>
    %28 = arith.addf %25, %27 : vector<8x8x32xf32>
    %cst_15 = arith.constant dense<0.000000e+00> : vector<8x32xf32>
    %29 = vector.multi_reduction <add>, %28, %cst_15 [0] : vector<8x8x32xf32> to vector<8x32xf32>
    %30 = arith.addf %10, %29 : vector<8x32xf32>
    %31 = tpu.concatenate %23, %30 in 1 : vector<8x32xf32>, vector<8x32xf32> -> vector<8x64xf32>
    %32 = arith.truncf %31 : vector<8x64xf32> to vector<8x64xbf16>
    %c0_16 = arith.constant 0 : index
    %c0_17 = arith.constant 0 : index
    %33 = vector.load %arg4[%c0_16, %c0_17] : memref<64x576xbf16, #tpu.memory_space<vmem>>, vector<64x576xbf16>
    %cst_18 = arith.constant dense<0.000000e+00> : vector<8x576xf32>
    %34 = tpu.matmul %32, %33, %cst_18 {dimension_numbers = #tpu.dot_dimension_numbers<[1], [0], [0], [1], [0, 0, 1, 1], [], []>} : vector<8x64xbf16>, vector<64x576xbf16>, vector<8x576xf32> -> vector<8x576xf32>
    %c0_19 = arith.constant 0 : index
    %c0_20 = arith.constant 0 : index
    %c0_21 = arith.constant 0 : index
    %35 = vector.load %arg7[%c0_19, %c0_20, %c0_21] : memref<1x8x8xbf16, #tpu.memory_space<vmem>>, vector<1x8x8xbf16>
    %36 = vector.shape_cast %35 : vector<1x8x8xbf16> to vector<8x8xbf16>
    %cst_22 = arith.constant dense<0.000000e+00> : vector<8x576xf32>
    %37 = tpu.matmul %36, %4, %cst_22 {dimension_numbers = #tpu.dot_dimension_numbers<[1], [0], [0], [1], [0, 0, 1, 1], [], []>} : vector<8x8xbf16>, vector<8x576xbf16>, vector<8x576xf32> -> vector<8x576xf32>
    %38 = arith.addf %34, %37 : vector<8x576xf32>
    %c0_23 = arith.constant 0 : index
    %c0_24 = arith.constant 0 : index
    %c0_25 = arith.constant 0 : index
    %39 = vector.load %arg8[%c0_23, %c0_24, %c0_25] : memref<1x8x1xf32, #tpu.memory_space<vmem>>, vector<1x8x1xf32>
    %40 = vector.shape_cast %39 : vector<1x8x1xf32> to vector<8x1xf32>
    %41 = vector.broadcast %40 : vector<8x1xf32> to vector<8x576xf32>
    %42 = arith.addf %38, %41 : vector<8x576xf32>
    %c1_i32 = arith.constant 1 : i32
    %43 = arith.cmpi slt, %arg1, %c1_i32 : i32
    %44 = math.tanh %42 : vector<8x576xf32>
    %45 = arith.select %43, %44, %42 : vector<8x576xf32>
    %c0_26 = arith.constant 0 : index
    %c0_27 = arith.constant 0 : index
    %46 = vector.load %arg10[%c0_26, %c0_27] : memref<8x576xf32, #tpu.memory_space<vmem>>, vector<8x576xf32>
    tpu.vector_store %arg10[%c0_26, %c0_27], %45 {strides = array<i32>} : memref<8x576xf32, #tpu.memory_space<vmem>>, vector<8x576xf32>,
    %c0_28 = arith.constant 0 : index
    %c0_29 = arith.constant 0 : index
    %c0_30 = arith.constant 0 : index
    %47 = vector.load %arg9[%c0_28, %c0_29, %c0_30] : memref<1x8x576xf32, #tpu.memory_space<vmem>>, vector<1x8x576xf32>
    %48 = vector.shape_cast %47 : vector<1x8x576xf32> to vector<8x576xf32>
    %49 = vector.shape_cast %45 : vector<8x576xf32> to vector<1x8x576xf32>
    tpu.vector_store %arg9[%c0_28, %c0_29, %c0_30], %49 {strides = array<i32>} : memref<1x8x576xf32, #tpu.memory_space<vmem>>, vector<1x8x576xf32>,
    return
  }
  func.func @transform_0(%arg0: i32, %arg1: i32) -> (i32, i32, i32) {
    %c0_i32 = arith.constant 0 : i32
    %c0_i32_0 = arith.constant 0 : i32
    %c0_i32_1 = arith.constant 0 : i32
    return %arg0, %c0_i32, %c0_i32_0 : i32, i32, i32
  }
  func.func @transform_1(%arg0: i32, %arg1: i32) -> (i32, i32) {
    %c0_i32 = arith.constant 0 : i32
    %c0_i32_0 = arith.constant 0 : i32
    %c0_i32_1 = arith.constant 0 : i32
    return %c0_i32, %c0_i32_0 : i32, i32
  }
  func.func @transform_2(%arg0: i32, %arg1: i32) -> (i32, i32) {
    %c0_i32 = arith.constant 0 : i32
    %c0_i32_0 = arith.constant 0 : i32
    %c0_i32_1 = arith.constant 0 : i32
    return %c0_i32, %c0_i32_0 : i32, i32
  }
  func.func @transform_3(%arg0: i32, %arg1: i32) -> (i32, i32, i32, i32) {
    %c0_i32 = arith.constant 0 : i32
    %c0_i32_0 = arith.constant 0 : i32
    %c0_i32_1 = arith.constant 0 : i32
    %c0_i32_2 = arith.constant 0 : i32
    return %arg1, %c0_i32, %c0_i32_0, %c0_i32_1 : i32, i32, i32, i32
  }
  func.func @transform_4(%arg0: i32, %arg1: i32) -> (i32, i32, i32, i32) {
    %c0_i32 = arith.constant 0 : i32
    %c0_i32_0 = arith.constant 0 : i32
    %c0_i32_1 = arith.constant 0 : i32
    %c0_i32_2 = arith.constant 0 : i32
    return %arg1, %c0_i32, %c0_i32_0, %c0_i32_1 : i32, i32, i32, i32
  }
  func.func @transform_5(%arg0: i32, %arg1: i32) -> (i32, i32, i32) {
    %c0_i32 = arith.constant 0 : i32
    %c0_i32_0 = arith.constant 0 : i32
    %c0_i32_1 = arith.constant 0 : i32
    return %arg1, %c0_i32, %c0_i32_0 : i32, i32, i32
  }
  func.func @transform_6(%arg0: i32, %arg1: i32) -> (i32, i32, i32) {
    %c0_i32 = arith.constant 0 : i32
    %c0_i32_0 = arith.constant 0 : i32
    %c0_i32_1 = arith.constant 0 : i32
    return %arg1, %c0_i32, %c0_i32_0 : i32, i32, i32
  }
  func.func @transform_7(%arg0: i32, %arg1: i32) -> (i32, i32, i32) {
    %c0_i32 = arith.constant 0 : i32
    %c0_i32_0 = arith.constant 0 : i32
    %c0_i32_1 = arith.constant 0 : i32
    return %arg0, %c0_i32, %c0_i32_0 : i32, i32, i32
  }
}

</mosaic_0001>

<bundles_post_ra>
// kernel: forward.1
= control target key start
LH: loop header
LB: loop body
LE: loop exit
PB: predicated region body
PF: predicated region fallthrough
CT: control target
= control target key end

     0   :  { %s2046_s24 = smov 0   ;;  %s2048_s25 = smov 0   ;;  %s2544_s0 = inlined_call_operand.vmem [shape: f32[2,8,576], index: 0, kind: input, shape index: {}]   ;;  %s2545_s1 = inlined_call_operand.vmem [shape: bf16[576,64], index: 1, kind: input, shape index: {}]   ;;  %s2546_s2 = inlined_call_operand.vmem [shape: bf16[64,576], index: 2, kind: input, shape index: {}]   ;;  %s2547_s3 = inlined_call_operand.vmem [shape: f32[2,8,8,32], index: 3, kind: input, shape index: {}]   ;;  %s2548_s4 = inlined_call_operand.vmem [shape: f32[2,8,8,32], index: 4, kind: input, shape index: {}]   ;;  %s2549_s5 = inlined_call_operand.vmem [shape: bf16[2,8,8], index: 5, kind: input, shape index: {}]   ;;  %s2550_s6 = inlined_call_operand.vmem [shape: f32[2,8,1], index: 6, kind: input, shape index: {}]   ;;  %s2551_s7 = inlined_call_operand.vmem [shape: f32[2,8,576], index: 7, kind: output, shape index: {}]  }
   0x1   :  { %s2050_s26 = smov 0   ;;  %s2052_s27 = smov 0  }
   0x2   :  { %s2054_s28 = smov 0  }
   0x3 LB: > { %s26_s29 = sadd.s32 1, %s1990_s26  ;;  %s29_s30 = sadd.s32 1, %s1994_s27  ;;  %s1998_s28 = sphi %s2054_s28, %s17_s28   ;;  %s1994_s27 = sphi %s2052_s27, %s2561_s27   ;;  %s1990_s26 = sphi %s2050_s26, %s2560_s26   ;;  %s1986_s25 = sphi %s2048_s25, %s2559_s25   ;;  %s1982_s24 = sphi %s2046_s24, %s2558_s24  }
   0x4   : > { %p27_p0 = scmp.ge.s32.totalorder %s26_s29, 2  ;;  %p1672_p1 = scmp.ge.s32.totalorder %s1998_s28, 1 }
   0x5   : > { %p287_p2 = scmp.lt.s32.totalorder %s1998_s28, 5 }
   0x6   : > { %s2563_s29 = smov (%p27_p0, %s26_s29), 0  ;;  %s2565_s30 = smov (!%p27_p0, %s29_s30), %s1994_s27 }
   0x7   : > { %2552 = sst [smem:[#allocation3_spill]] %s2563_s29  ;;  %p288_p3 = pnand %p1672_p1, %p287_p2 }
   0x8   : > { %p31_p4 = scmp.ge.s32.totalorder %s2565_s30, 2  ;;  %p337_p5 = scmp.lt.s32.totalorder (!%p288_p3), %s1986_s25, 1 }
   0x9   : > { %291 = sbr.rel (%p288_p3) target bundleno = 774 (0x306), region = 48  ;;  %p342_p6 = scmp.lt.s32.totalorder (!%p288_p3), %s1982_s24, 1 }
   0xa   : > { %s2567_s30 = smov (%p31_p4, %s2565_s30), 0  ;;  %p1681_p7 = scmp.ne.s32.totalorder (!%p288_p3), %s1982_s24, 0 }
   0xb   : > { %2553 = sst [smem:[#allocation4_spill]] %s2567_s30 }
   0xe   : > { %s2569_s25 = smov (!%p337_p5, %s1986_s25), 1 }
   0xf   : > { %s343_s8 = scalar_select %p342_p6, %s1982_s24, 1 }
  0x10   : > { %s1837_s9 = smul.u32 40, %s2569_s25 }
  0x11   : > { %s1749_s10 = sshll.u32 %s343_s8, 6  ;;  %s1678_s11 = sshll.u32 %s343_s8, 2 }
  0x12   : > { %s341_s14 = scalar_lea.vmem %s2544_s0, %s1837_s9  ;;  %s2088_s17 = scalar_lea.vmem %s2547_s3, %s1749_s10 }
  0x13   : > { %s2093_s20 = scalar_lea.vmem %s2548_s4, %s1749_s10  ;;  %s2098_s23 = scalar_lea.vmem %s2549_s5, %s1678_s11 }
  0x14   : > { %s1679_s25 = sshll.u32 %s343_s8, 3  ;;  %s2103_s12 = scalar_lea.vmem %s2551_s7, %s1837_s9 }
  0x15   : > { %s2108_s16 = scalar_lea.vmem %s2550_s6, %s1679_s25  ;;  %369 = sbr.rel (%p1681_p7) target bundleno = 30 (0x1e), region = 52 }
  0x1a   : > { %v370_v0 = vld [vmem:[%s341_s14] sm:$0xff]  ;;  %v371_v1 = vld [vmem:[%s341_s14 + $0x8] sm:$0xff]  ;;  %v372_v2 = vld [vmem:[%s341_s14 + $0x10] sm:$0xff]  ;;  %vm379_vm0 = vcmask 523264  }
  0x1b   : > { %375 = vst [vmem:[#allocation2] sm:$0xff] %v370_v0  ;;  %376 = vst [vmem:[#allocation2 + $0x8] sm:$0xff] %v371_v1  ;;  %v373_v3 = vld [vmem:[%s341_s14 + $0x18] sm:$0xff]  ;;  %v374_v4 = vld [vmem:[%s341_s14 + $0x20] sm:$0xff] }
  0x1c   : > { %377 = vst [vmem:[#allocation2 + $0x10] sm:$0xff] %v372_v2  ;;  %378 = vst [vmem:[#allocation2 + $0x18] sm:$0xff] %v373_v3 }
  0x1d   : > { %380 = vst.msk [vmem:[#allocation2 + $0x20] sm:$0xff] %vm379_vm0, %v374_v4 }
  0x1e PF: > { %v1886_v5 = vld [vmem:[%s2545_s1 + $0x78] sm:$0xff]   ;;  %v1890_v9 = vld [vmem:[%s2545_s1 + $0x70] sm:$0xff]   ;;  %v1894_v13 = vld [vmem:[%s2545_s1 + $0x68] sm:$0xff]   ;;  %v2000_v44 = vmov 0.0   ;;  %vm2001_vm1 = vmmov 0   ;;  %s2002_s13 = smov 32  }
  0x1f   : > { %v1887_v6 = vld [vmem:[%s2545_s1 + $0xf8] sm:$0xff]   ;;  %1751 = vmatprep.subr.bf16.mxu0 %v1886_v5  ;;  %v1891_v10 = vld [vmem:[%s2545_s1 + $0xf0] sm:$0xff]   ;;  %v1895_v14 = vld [vmem:[%s2545_s1 + $0xe8] sm:$0xff]   ;;  %vm679_vm2 = vcmask 523264   ;;  %vm1153_vm3 = vcmask 1043456   ;;  %vm1149_vm4 = vcmask 64512  }
  0x20   : > { %v1888_v7 = vld [vmem:[%s2545_s1 + $0x38] sm:$0xff]   ;;  %1773 = vmatprep.subr.bf16.mxu1 %v1887_v6  ;;  %v1892_v11 = vld [vmem:[%s2545_s1 + $0x30] sm:$0xff]   ;;  %v1896_v15 = vld [vmem:[%s2545_s1 + $0x28] sm:$0xff]   ;;  %vm997_vm5 = vcmask 261120   ;;  %s1536_s14 = scalar_select %p342_p6, 1, 0 }
  0x21   : > { %v1889_v8 = vld [vmem:[%s2545_s1 + $0xb8] sm:$0xff]   ;;  %1752 = vmatpush3.bf16.msra.mxu0 %v1888_v7  ;;  %v1893_v12 = vld [vmem:[%s2545_s1 + $0xb0] sm:$0xff]   ;;  %v1897_v16 = vld [vmem:[%s2545_s1 + $0xa8] sm:$0xff]  }
  0x22   : > { %1774 = vmatpush3.bf16.msra.mxu1 %v1889_v8  ;;  %1753 = vmatprep.subr.bf16.mxu0 %v1890_v9  ;;  %v1898_v17 = vld [vmem:[%s2545_s1 + $0x60] sm:$0xff]   ;;  %v1902_v21 = vld [vmem:[%s2545_s1 + $0x58] sm:$0xff]   ;;  %v1906_v25 = vld [vmem:[%s2545_s1 + $0x50] sm:$0xff]  }
  0x23   : > { %1775 = vmatprep.subr.bf16.mxu1 %v1891_v10  ;;  %v1899_v18 = vld [vmem:[%s2545_s1 + $0xe0] sm:$0xff]   ;;  %v1903_v22 = vld [vmem:[%s2545_s1 + $0xd8] sm:$0xff]   ;;  %v1907_v26 = vld [vmem:[%s2545_s1 + $0xd0] sm:$0xff]  }
  0x24   : > { %v1900_v19 = vld [vmem:[%s2545_s1 + $0x20] sm:$0xff]   ;;  %v1904_v23 = vld [vmem:[%s2545_s1 + $0x18] sm:$0xff]   ;;  %v1908_v27 = vld [vmem:[%s2545_s1 + $0x10] sm:$0xff]  }
  0x25   : > { %1754 = vmatpush3.bf16.msra.mxu0 %v1892_v11  ;;  %v1901_v20 = vld [vmem:[%s2545_s1 + $0xa0] sm:$0xff]   ;;  %v1905_v24 = vld [vmem:[%s2545_s1 + $0x98] sm:$0xff]   ;;  %v1909_v28 = vld [vmem:[%s2545_s1 + $0x90] sm:$0xff]   ;;  %v2003_v11 = vmov 1966171168  }
  0x26   : > { %1776 = vmatpush3.bf16.msra.mxu1 %v1893_v12  ;;  %1755 = vmatprep.subr.bf16.mxu0 %v1894_v13  ;;  %v1910_v29 = vld [vmem:[%s2545_s1 + $0x48] sm:$0xff]   ;;  %v1914_v33 = vld [vmem:[%s2545_s1 + $0x40] sm:$0xff]   ;;  %v384_v38 = vld [vmem:[#allocation2 + $0x18] sm:$0xff]  ;;  %v806_v12 = vunpack.c.l.s4 %v2003_v11  ;;  %v808_v13 = vlaneseq }
  0x27   : > { %1777 = vmatprep.subr.bf16.mxu1 %v1895_v14  ;;  %v1911_v30 = vld [vmem:[%s2545_s1 + $0xc8] sm:$0xff]   ;;  %v1915_v34 = vld [vmem:[%s2545_s1 + $0xc0] sm:$0xff]   ;;  %v2209_v41 = vpack.c.bf16 %v384_v38, %v384_v38  ;;  %v383_v43 = vld [vmem:[#allocation2 + $0x10] sm:$0xff] }
  0x28   : > { %v1912_v31 = vld [vmem:[%s2545_s1 + $0x8] sm:$0xff]   ;;  %v1916_v35 = vld [vmem:[%s2545_s1] sm:$0xff]   ;;  %v2214_v45 = vpack.c.bf16 %v383_v43, %v383_v43  ;;  %v1918_v46 = vld [vmem:[%s2545_s1 + $0x118] sm:$0xff]  }
  0x29   : > { %1756 = vmatpush3.bf16.msra.mxu0 %v1896_v15  ;;  %v1913_v32 = vld [vmem:[%s2545_s1 + $0x88] sm:$0xff]   ;;  %v1917_v36 = vld [vmem:[%s2545_s1 + $0x80] sm:$0xff]   ;;  %755 = vmatprep.mubr.bf16.mxu1 %v2209_v41  ;;  %v1919_v47 = vld [vmem:[%s2545_s1 + $0x110] sm:$0xff]  }
  0x2a   : > { %1778 = vmatpush3.bf16.msra.mxu1 %v1897_v16  ;;  %1757 = vmatprep.subr.bf16.mxu0 %v1898_v17  ;;  %v382_v37 = vld [vmem:[#allocation2 + $0x8] sm:$0xff]  ;;  %v381_v39 = vld [vmem:[#allocation2] sm:$0xff]  ;;  %v2229_v48 = vld [vmem:[%s2088_s17 + $0x10] sm:$0xff]  ;;  %v807_v17 = vunpack.c.0.s8 %v806_v12 }
  0x2b   : > { %1779 = vmatprep.subr.bf16.mxu1 %v1899_v18  ;;  %v2207_v40 = vpack.c.bf16 %v382_v37, %v382_v37  ;;  %v2211_v42 = vpack.c.bf16 %v381_v39, %v381_v39  ;;  %1034 = vrot.lane.b32.xlu1 %v2229_v48, %s2002_s13  ;;  %v2235_v49 = vld [vmem:[%s2088_s17] sm:$0xff]  ;;  %v2238_v50 = vld [vmem:[%s2088_s17 + $0x18] sm:$0xff]  ;;  %v2243_v51 = vld [vmem:[%s2088_s17 + $0x8] sm:$0xff]  ;;  %v809_v18 = vshrl.u32 %v808_v13, 7 }
  0x2c   : > { %1030 = vrot.lane.b32.xlu0 %v2235_v49, %s2002_s13  ;;  %v1920_v52 = vld [vmem:[%s2545_s1 + $0x108] sm:$0xff]   ;;  %v2255_v54 = vld [vmem:[%s2088_s17 + $0x20] sm:$0xff]  ;;  %v2263_v57 = vld [vmem:[%s2088_s17 + $0x38] sm:$0xff] }
  0x2d   : > { %1758 = vmatpush3.bf16.msra.mxu0 %v1900_v19  ;;  %715 = vmatprep.mubr.bf16.mxu0 %v2207_v40  ;;  %v2249_v53 = vld [vmem:[%s2088_s17 + $0x28] sm:$0xff]  ;;  %v1921_v55 = vld [vmem:[%s2545_s1 + $0x100] sm:$0xff]   ;;  %v2269_v58 = vld [vmem:[%s2088_s17 + $0x30] sm:$0xff]  ;;  %s2004_s17 = smov 96  }
  0x2e   : > { %1780 = vmatpush3.bf16.msra.mxu1 %v1901_v20  ;;  %1759 = vmatprep.subr.bf16.mxu0 %v1902_v21  ;;  %v385_v56 = vld [vmem:[#allocation2 + $0x20] sm:$0xff]  ;;  %v2279_v60 = vld [vmem:[%s2093_s20 + $0x8] sm:$0xff]  ;;  %v2293_v62 = vld [vmem:[%s2093_s20 + $0x18] sm:$0xff]  ;;  %v810_v20 = vsub.s32 %v807_v17, %v809_v18 }
  0x2f   : > { %1781 = vmatprep.subr.bf16.mxu1 %v1903_v22  ;;  %1036 = vrot.lane.b32.xlu1 %v2238_v50, %s2002_s13  ;;  %v2273_v59 = vpack.c.bf16 %v385_v56, %v385_v56  ;;  %v2286_v61 = vld [vmem:[%s2093_s20] sm:$0xff]  ;;  %v2298_v63 = vld [vmem:[%s2093_s20 + $0x10] sm:$0xff]  ;;  %v2310_v1 = vld [vmem:[%s2093_s20 + $0x28] sm:$0xff] }
  0x30   : > { %1032 = vrot.lane.b32.xlu0 %v2243_v51, %s2002_s13  ;;  %v2303_v0 = vld [vmem:[%s2093_s20 + $0x20] sm:$0xff]  ;;  %v2336_v12 = vld [vmem:[%s2093_s20 + $0x38] sm:$0xff] }
  0x31   : > { %1760 = vmatpush3.bf16.msra.mxu0 %v1904_v23 }
  0x32   : > { %1782 = vmatpush3.bf16.msra.mxu1 %v1905_v24  ;;  %1761 = vmatprep.subr.bf16.mxu0 %v1906_v25 }
  0x33   : > { %1783 = vmatprep.subr.bf16.mxu1 %v1907_v26  ;;  %1040 = vrot.lane.b32.xlu1 %v2249_v53, %s2002_s13 }
  0x34   : > { %1038 = vrot.lane.b32.xlu0 %v2255_v54, %s2002_s13 }
  0x35   : > { %1762 = vmatpush3.bf16.msra.mxu0 %v1908_v27  ;;  %v871_v27 = vsub.s32 0, %v809_v18 }
  0x36   : > { %1784 = vmatpush3.bf16.msra.mxu1 %v1909_v28  ;;  %1763 = vmatprep.subr.bf16.mxu0 %v1910_v29 }
  0x37   : > { %1785 = vmatprep.subr.bf16.mxu1 %v1911_v30  ;;  %1044 = vrot.lane.b32.xlu1 %v2263_v57, %s2002_s13 }
  0x38   : > { %1042 = vrot.lane.b32.xlu0 %v2269_v58, %s2002_s13 }
  0x39   : > { %1764 = vmatpush3.bf16.msra.mxu0 %v1912_v31 }
  0x3a   : > { %1786 = vmatpush3.bf16.msra.mxu1 %v1913_v32  ;;  %1765 = vmatprep.subr.bf16.mxu0 %v1914_v33 }
  0x3b   : > { %1787 = vmatprep.subr.bf16.mxu1 %v1915_v34  ;;  %927 = vrot.lane.b32.xlu1 %v2279_v60, %s2002_s13 }
  0x3c   : > { %925 = vrot.lane.b32.xlu0 %v2286_v61, %s2002_s13 }
  0x3d   : > { %1766 = vmatpush3.bf16.msra.mxu0 %v1916_v35 }
  0x3e   : > { %1788 = vmatpush3.bf16.msra.mxu1 %v1917_v36  ;;  %1807 = vmatprep.subr.bf16.mxu0 %v2000_v44 }
  0x3f   : > { %931 = vrot.lane.b32.xlu1 %v2293_v62, %s2002_s13  ;;  %1719 = vmatprep.subr.msk.bf16.mxu1 %vm1153_vm3, %v2207_v40 }
  0x40   : > { %716 = vmatmul.mubr.bf16.vlgmr.msra.gmra.mxu0 %v2211_v42  ;;  %929 = vrot.lane.b32.xlu0 %v2298_v63, %s2002_s13 }
  0x41   : > { %756 = vmatmul.mubr.bf16.vlgmr.msra.gmra.mxu1 %v2214_v45  ;;  %1808 = vmatpush3.bf16.msra.mxu0 %v1918_v46 }
  0x42   : > { %1815 = vmatprep.mubr.msk.bf16.mxu0 %vm2001_vm1, %v2000_v44  ;;  %1809 = vmatprep.subr.bf16.mxu0 %v2000_v44 }
  0x43   : > { %933 = vrot.lane.b32.xlu1 %v2303_v0, %s2002_s13 }
  0x45   : > { %1810 = vmatpush3.bf16.msra.mxu0 %v1919_v47 }
  0x46   : > { %1811 = vmatprep.subr.bf16.mxu0 %v2000_v44 }
  0x47   : > { %935 = vrot.lane.b32.xlu1 %v2310_v1, %s2002_s13 }
  0x49   : > { %1812 = vmatpush3.bf16.msra.mxu0 %v1920_v52 }
  0x4a   : > { %1813 = vmatprep.subr.bf16.mxu0 %v2000_v44 }
  0x4d   : > { %1814 = vmatpush3.bf16.msra.mxu0 %v1921_v55 }
  0x4e   : > { %1819 = vmatprep.subr.bf16.mxu0 %v2000_v44 }
  0x50   : > { %1816 = vmatmul.mubr.msk.bf16.vlgmr.msra.gmra.mxu0 %vm679_vm2, %v2273_v59 }
  0x51   : > { %1821 = vmatprep.mubr.msk.bf16.mxu0 %vm2001_vm1, %v2000_v44 }
  0x9d   : > { %v1035_v8 = vpop.permute.xlu1 %1034 }
  0x9e   : > { %v1031_v29 = vpop.permute.xlu0 %1030 }
  0xa1   : > { %v1037_v16 = vpop.permute.xlu1 %1036 }
  0xa2   : > { %v1033_v47 = vpop.permute.xlu0 %1032 }
  0xa5   : > { %v1041_v22 = vpop.permute.xlu1 %1040 }
  0xa9   : > { %v1045_v34 = vpop.permute.xlu1 %1044 }
 0x100   : > { %v1767_v2 = vpop.f32.mrf.mxu0 }
 0x101   : > { %v1789_v3 = vpop.f32.mrf.mxu1 }
 0x102   : > { %v1768_v4 = vpop.f32.mrf.mxu0 }
 0x103   : > { %v1790_v5 = vpop.f32.mrf.mxu1  ;;  %v1769_v14 = vadd.f32 %v1768_v4, %v1767_v2  ;;  %v928_v2 = vpop.permute.xlu1 %927  ;;  %v2325_v4 = vld [vmem:[%s2093_s20 + $0x30] sm:$0xff] }
 0x104   : > { %v1770_v6 = vpop.f32.mrf.mxu0  ;;  %v1791_v15 = vadd.f32 %v1790_v5, %v1789_v3 }
 0x105   : > { %v1792_v7 = vpop.f32.mrf.mxu1 }
 0x106   : > { %v1771_v9 = vpop.f32.mrf.mxu0  ;;  %v758_v19 = vadd.f32 %v1791_v15, %v1769_v14 }
 0x107   : > { %v1793_v10 = vpop.f32.mrf.mxu1  ;;  %v932_v11 = vpop.permute.xlu1 %931 }
 0x108   : > { %v1039_v10 = vpop.permute.xlu0 %1038 }
 0x110   : > { %v797_v21 = vpop.f32.mrf.mxu0 }
 0x111   : > { %v798_v23 = vadd.f32 %v797_v21, %v758_v19  ;;  %v1043_v19 = vpop.permute.xlu0 %1042 }
 0x112   : > { %v1817_v24 = vpop.f32.mrf.mxu0 }
 0x113   : > { %v804_v25 = vcombine.high %v798_v23, %v798_v23  ;;  %v811_v26 = vrot.slane %v798_v23, %v810_v20 }
 0x114   : > { %v800_v28 = vpop.f32.mrf.mxu0 }
 0x115   : > { %v818_v30 = vrot.slane %v804_v25, %v810_v20  ;;  %v819_v31 = vcombine.high %v811_v26, %v811_v26  ;;  %v827_v32 = vrot.slane %v811_v26, %v810_v20  ;;  %v926_v26 = vpop.permute.xlu0 %925 }
 0x116   : > { %v1818_v33 = vpop.f32.mrf.mxu0 }
 0x117   : > { %v820_v35 = vcombine.high %v818_v30, %v818_v30  ;;  %v841_v36 = vrot.slane %v819_v31, %v810_v20  ;;  %v849_v37 = vcombine.high %v827_v32, %v827_v32  ;;  %v2314_v38 = vrot.slane %v827_v32, %v871_v27  ;;  %v1148_v32 = vld [vmem:[%s2098_s23] sm:$0xf] }
 0x118   : > { %v834_v52 = vrot.slane %v818_v30, %v810_v20  ;;  %v1155_v30 = vsel %vm1153_vm3, %v2211_v42, 0  ;;  %v2005_v31 = vmov 0   ;;  %v1161_v42 = vsel %vm1153_vm3, %v2214_v45, 0  ;;  %v1924_v45 = vld [vmem:[%s2546_s2 + $0x7c] ss:$20 sps:$4 sm:$0xff]  }
 0x119   : > { %v2316_v39 = vrot.slane %v841_v36, %v871_v27  ;;  %v848_v43 = vrot.slane %v820_v35, %v810_v20  ;;  %v1054_v46 = vmul.f32 %v1031_v29, %v2314_v38  ;;  %v2319_v55 = vrot.slane %v849_v37, %v871_v27  ;;  %v934_v20 = vpop.permute.xlu1 %933  ;;  %1200 = vmatprep.mubr.bf16.mxu1 %v2005_v31 }
 0x11a   : > { %v851_v5 = vcombine.high %v841_v36, %v841_v36  ;;  %v2327_v6 = vrot.slane %v834_v52, %v871_v27  ;;  %1183 = vmatpush1.bf16.msra.mxu1 %v1155_v30  ;;  %1884 = vset.pattern.permute.xlu1 %v2005_v31  ;;  %v1166_v37 = vsel %vm1153_vm3, %v2273_v59, 0 }
 0x11b   : > { %1070 = vrot.lane.b32.xlu1 %v1054_v46, %s2004_s17  ;;  %v1055_v56 = vmul.f32 %v1033_v47, %v2316_v39  ;;  %v852_v3 = vcombine.high %v848_v43, %v848_v43  ;;  %v1056_v7 = vmul.f32 %v1035_v8, %v2319_v55  ;;  %v850_v8 = vcombine.high %v834_v52, %v834_v52  ;;  %v1927_v46 = vld [vmem:[%s2546_s2 + $0x84] ss:$20 sps:$4 sm:$0xff]   ;;  %v1930_v47 = vld [vmem:[%s2546_s2 + $0x54] ss:$20 sps:$4 sm:$0xff]  }
 0x11c   : > { %v2338_v13 = vrot.slane %v851_v5, %v871_v27  ;;  %v1058_v14 = vmul.f32 %v1039_v10, %v2327_v6  ;;  %v2345_v17 = vrot.slane %v848_v43, %v871_v27  ;;  %v950_v21 = vmul.f32 %v928_v2, %v2316_v39  ;;  %1721 = vmatprep.subr.msk.bf16.mxu1 %vm1153_vm3, %v2209_v41  ;;  %v1922_v43 = vld [vmem:[%s2546_s2 + $0x78] ss:$20 sps:$4 sm:$0xff]   ;;  %v1933_v2 = vld [vmem:[%s2546_s2 + $0x5c] ss:$20 sps:$4 sm:$0xff]  }
 0x11d   : > { %1072 = vrot.lane.b32.xlu0 %v1055_v56, %s2004_s17  ;;  %v2333_v9 = vrot.slane %v852_v3, %v871_v27  ;;  %v2351_v23 = vrot.slane %v850_v8, %v871_v27  ;;  %v936_v28 = vpop.permute.xlu1 %935  ;;  %v949_v27 = vmul.f32 %v926_v26, %v2314_v38  ;;  %1720 = vmatmul.mubr.msk.bf16.vlgmr.msra.gmra.mxu1 %vm1149_vm4, %v1148_v32  ;;  %v1928_v56 = vld [vmem:[%s2546_s2 + $0x50] ss:$20 sps:$4 sm:$0xff]   ;;  %v1931_v8 = vld [vmem:[%s2546_s2 + $0x58] ss:$20 sps:$4 sm:$0xff]  }
 0x11e   : > { %v1057_v18 = vmul.f32 %v1037_v16, %v2338_v13  ;;  %v1059_v24 = vmul.f32 %v1041_v22, %v2345_v17  ;;  %v952_v25 = vmul.f32 %v932_v11, %v2338_v13  ;;  %v954_v29 = vmul.f32 %v936_v28, %v2345_v17  ;;  %v930_v22 = vpop.permute.xlu0 %929  ;;  %1885 = vset.pattern.permute.xlu0 %v2005_v31  ;;  %v1936_v11 = vld [vmem:[%s2546_s2 + $0x2c] ss:$20 sps:$4 sm:$0xff]  }
 0x11f   : > { %937 = vrot.lane.b32.xlu1 %v2325_v4, %s2002_s13  ;;  %v1061_v15 = vmul.f32 %v1045_v34, %v2333_v9  ;;  %v1060_v16 = vmul.f32 %v1043_v19, %v2351_v23  ;;  %v951_v33 = vmul.f32 %v930_v22, %v2319_v55  ;;  %1241 = vmatprep.mubr.bf16.mxu1 %v2005_v31 }
 0x120   : > { %v953_v40 = vmul.f32 %v934_v20, %v2327_v6  ;;  %1224 = vmatpush1.bf16.msra.mxu1 %v1161_v42  ;;  %v1014_v41 = vmul.f32 %v2314_v38, %v2286_v61  ;;  %v1015_v36 = vmul.f32 %v2316_v39, %v2279_v60  ;;  %1820 = vmatpush3.bf16.msra.mxu0 %v1166_v37  ;;  %v1925_v60 = vld [vmem:[%s2546_s2 + $0x80] ss:$20 sps:$4 sm:$0xff]   ;;  %v1934_v20 = vld [vmem:[%s2546_s2 + $0x28] ss:$20 sps:$4 sm:$0xff]  }
 0x121   : > { %1074 = vrot.lane.b32.xlu0 %v1056_v7, %s2004_s17  ;;  %1405 = vmatprep.subr.bf16.mxu1 %v1924_v45  ;;  %v1016_v10 = vmul.f32 %v2319_v55, %v2298_v63  ;;  %v1939_v63 = vld [vmem:[%s2546_s2 + $0x34] ss:$20 sps:$4 sm:$0xff]   ;;  %v1018_v22 = vmul.f32 %v2327_v6, %v2303_v0  ;;  %v1017_v30 = vmul.f32 %v2338_v13, %v2293_v62 }
 0x122   : > { %1446 = vmatprep.subr.bf16.mxu0 %v1927_v46  ;;  %v1019_v0 = vmul.f32 %v2345_v17, %v2310_v1  ;;  %v1021_v45 = vmul.f32 %v2333_v9, %v2336_v12 }
 0x123   : > { %939 = vrot.lane.b32.xlu1 %v2336_v12, %s2002_s13  ;;  %1822 = vmatmul.mubr.msk.bf16.vlgmr.msra.gmra.mxu0 %vm1149_vm4, %v1148_v32 }
 0x124   : > { %1447 = vmatpush1.bf16.msra.mxu0 %v1925_v60  ;;  %1470 = vmatprep.mubr.bf16.mxu0 %v2005_v31  ;;  %v1020_v60 = vmul.f32 %v2351_v23, %v2325_v4 }
 0x125   : > { %1078 = vrot.lane.b32.xlu0 %v1058_v14, %s2004_s17  ;;  %1722 = vmatmul.mubr.msk.bf16.vlgmr.msra.gmra.mxu1 %vm1149_vm4, %v1148_v32 }
 0x126   : > { %1429 = vmatprep.mubr.bf16.mxu1 %v2005_v31  ;;  %1406 = vmatpush1.bf16.msra.mxu1 %v1922_v43 }
 0x127   : > { %1084 = vrot.lane.b32.xlu1 %v1061_v15, %s2004_s17  ;;  %1407 = vmatprep.subr.bf16.mxu1 %v1930_v47  ;;  %v910_v47 = vmul.f32 %v2316_v39, %v2243_v51  ;;  %v911_v39 = vmul.f32 %v2319_v55, %v2229_v48 }
 0x128   : > { %1448 = vmatprep.subr.bf16.mxu0 %v1933_v2 }
 0x129   : > { %1076 = vrot.lane.b32.xlu0 %v1057_v18, %s2004_s17  ;;  %1449 = vmatpush1.bf16.msra.mxu0 %v1931_v8 }
 0x12a   : > { %1408 = vmatpush1.bf16.msra.mxu1 %v1928_v56  ;;  %1450 = vmatprep.subr.bf16.mxu0 %v1939_v63 }
 0x12b   : > { %967 = vrot.lane.b32.xlu1 %v950_v21, %s2004_s17  ;;  %1409 = vmatprep.subr.bf16.mxu1 %v1936_v11 }
 0x12d   : > { %1080 = vrot.lane.b32.xlu0 %v1059_v24, %s2004_s17 }
 0x12e   : > { %1410 = vmatpush1.bf16.msra.mxu1 %v1934_v20 }
 0x12f   : > { %971 = vrot.lane.b32.xlu1 %v952_v25, %s2004_s17  ;;  %v1942_v25 = vld [vmem:[%s2546_s2 + $0x4] ss:$20 sps:$4 sm:$0xff]  }
 0x130   : > { %1411 = vmatprep.subr.bf16.mxu1 %v1942_v25 }
 0x131   : > { %1082 = vrot.lane.b32.xlu0 %v1060_v16, %s2004_s17  ;;  %v1937_v16 = vld [vmem:[%s2546_s2 + $0x30] ss:$20 sps:$4 sm:$0xff]  }
 0x132   : > { %1451 = vmatpush1.bf16.msra.mxu0 %v1937_v16 }
 0x133   : > { %975 = vrot.lane.b32.xlu1 %v954_v29, %s2004_s17  ;;  %v1945_v29 = vld [vmem:[%s2546_s2 + $0xc] ss:$20 sps:$4 sm:$0xff]  }
 0x134   : > { %1452 = vmatprep.subr.bf16.mxu0 %v1945_v29 }
 0x135   : > { %965 = vrot.lane.b32.xlu0 %v949_v27, %s2004_s17  ;;  %v1940_v27 = vld [vmem:[%s2546_s2] ss:$20 sps:$4 sm:$0xff]  }
 0x136   : > { %1412 = vmatpush1.bf16.msra.mxu1 %v1940_v27 }
 0x137   : > { %1825 = vmatprep.subr.bf16.mxu1 %v2000_v44 }
 0x139   : > { %969 = vrot.lane.b32.xlu0 %v951_v33, %s2004_s17  ;;  %v1943_v33 = vld [vmem:[%s2546_s2 + $0x8] ss:$20 sps:$4 sm:$0xff]  }
 0x13a   : > { %1453 = vmatpush1.bf16.msra.mxu0 %v1943_v33  ;;  %v916_v33 = vmul.f32 %v2333_v9, %v2263_v57  ;;  %v1947_v57 = vld [vmem:[%s2546_s2 + $0x60] ss:$20 sps:$4 sm:$0xff]  }
 0x13d   : > { %973 = vrot.lane.b32.xlu0 %v953_v40, %s2004_s17 }
 0x18d   : > { %v1071_v34 = vpop.permute.xlu1 %1070 }
 0x18e   : > { %v1094_v35 = vadd.f32 %v1071_v34, %v1014_v41 }
 0x18f   : > { %v1073_v61 = vpop.permute.xlu0 %1072 }
 0x190   : > { %v1095_v59 = vadd.f32 %v1073_v61, %v1015_v36  ;;  %v1102_v3 = vsel %vm997_vm5, %v1094_v35, 0.0 }
 0x191   : > { %v938_v52 = vpop.permute.xlu1 %937 }
 0x192   : > { %v1103_v5 = vsel %vm997_vm5, %v1095_v59, 0.0  ;;  %v955_v7 = vmul.f32 %v938_v52, %v2351_v23 }
 0x193   : > { %v1104_v14 = vadd.f32 %v1103_v5, %v1102_v3  ;;  %v1075_v15 = vpop.permute.xlu0 %1074  ;;  %v909_v3 = vmul.f32 %v2314_v38, %v2235_v49 }
 0x194   : > { %v1096_v18 = vadd.f32 %v1075_v15, %v1016_v10  ;;  %977 = vrot.lane.b32.xlu0 %v955_v7, %s2004_s17  ;;  %v912_v15 = vmul.f32 %v2338_v13, %v2238_v50  ;;  %v913_v50 = vmul.f32 %v2327_v6, %v2255_v54  ;;  %v915_v6 = vmul.f32 %v2351_v23, %v2269_v58  ;;  %v1949_v23 = vld [vmem:[%s2546_s2 + $0x10] ss:$20 sps:$4 sm:$0xff]  }
 0x195   : > { %v940_v19 = vpop.permute.xlu1 %939 }
 0x196   : > { %v1105_v21 = vsel %vm997_vm5, %v1096_v18, 0.0  ;;  %v956_v24 = vmul.f32 %v940_v19, %v2333_v9  ;;  %v914_v19 = vmul.f32 %v2345_v17, %v2249_v53  ;;  %v1948_v9 = vld [vmem:[%s2546_s2 + $0x38] ss:$20 sps:$4 sm:$0xff]  }
 0x197   : > { %v1106_v26 = vadd.f32 %v1105_v21, %v1104_v14  ;;  %v1079_v28 = vpop.permute.xlu0 %1078 }
 0x198   : > { %979 = vrot.lane.b32.xlu1 %v956_v24, %s2004_s17  ;;  %v1098_v40 = vadd.f32 %v1079_v28, %v1018_v22 }
 0x199   : > { %v1085_v31 = vpop.permute.xlu1 %1084 }
 0x19a   : > { %v1109_v35 = vsel %vm997_vm5, %v1098_v40, 0.0  ;;  %v1101_v59 = vadd.f32 %v1085_v31, %v1021_v45 }
 0x19b   : > { %v1077_v32 = vpop.permute.xlu0 %1076 }
 0x19c   : > { %v1097_v42 = vadd.f32 %v1077_v32, %v1017_v30  ;;  %v1115_v10 = vsel %vm997_vm5, %v1101_v59, 0.0 }
 0x19d   : > { %v968_v37 = vpop.permute.xlu1 %967 }
 0x19e   : > { %v1107_v41 = vsel %vm997_vm5, %v1097_v42, 0.0  ;;  %v990_v56 = vsub.f32 %v910_v47, %v968_v37 }
 0x19f   : > { %v1108_v62 = vadd.f32 %v1107_v41, %v1106_v26  ;;  %v1081_v34 = vpop.permute.xlu0 %1080  ;;  %v1519_v26 = vld [vmem:[%s2108_s16] sm:$0xff] }
 0x1a0   : > { %v1099_v36 = vadd.f32 %v1081_v34, %v1019_v0  ;;  %v999_v14 = vsel %vm997_vm5, %v990_v56, 0.0  ;;  %1522 = vperm.xlu1 %1884, %v1519_v26  }
 0x1a1   : > { %v1110_v43 = vadd.f32 %v1109_v35, %v1108_v62  ;;  %v972_v5 = vpop.permute.xlu1 %971 }
 0x1a2   : > { %v1111_v61 = vsel %vm997_vm5, %v1099_v36, 0.0  ;;  %v992_v38 = vsub.f32 %v912_v15, %v972_v5  ;;  %v1946_v36 = vld [vmem:[%s2546_s2 + $0x88] ss:$20 sps:$4 sm:$0xff]  }
 0x1a3   : > { %v1112_v46 = vadd.f32 %v1111_v61, %v1110_v43  ;;  %v1083_v1 = vpop.permute.xlu0 %1082 }
 0x1a4   : > { %v1100_v52 = vadd.f32 %v1083_v1, %v1020_v60  ;;  %v1003_v48 = vsel %vm997_vm5, %v992_v38, 0.0 }
 0x1a5   : > { %v976_v63 = vpop.permute.xlu1 %975 }
 0x1a6   : > { %v1113_v2 = vsel %vm997_vm5, %v1100_v52, 0.0  ;;  %v994_v55 = vsub.f32 %v914_v19, %v976_v63 }
 0x1a7   : > { %v1114_v12 = vadd.f32 %v1113_v2, %v1112_v46  ;;  %v966_v7 = vpop.permute.xlu0 %965 }
 0x1a8   : > { %v989_v11 = vsub.f32 %v909_v3, %v966_v7  ;;  %v1007_v29 = vsel %vm997_vm5, %v994_v55, 0.0 }
 0x1a9   : > { %v1116_v4 = vadd.f32 %v1115_v10, %v1114_v12 }
 0x1aa   : > { %v998_v51 = vsel %vm997_vm5, %v989_v11, 0.0 }
 0x1ab   : > { %v1000_v8 = vadd.f32 %v999_v14, %v998_v51  ;;  %v970_v49 = vpop.permute.xlu0 %969  ;;  %1119 = vrot.lane.b32.xlu0 %v1116_v4, %s2002_s13 }
 0x1ac   : > { %v991_v18 = vsub.f32 %v911_v39, %v970_v49  ;;  %v1537_v49 = vstv %s1536_s14 }
 0x1ad   : > { %vm2508_vm6 = vcmp.eq.s32.totalorder %v1537_v49, 1 }
 0x1ae   : > { %v1001_v20 = vsel %vm997_vm5, %v991_v18, 0.0 }
 0x1af   : > { %v1002_v13 = vadd.f32 %v1001_v20, %v1000_v8  ;;  %v974_v21 = vpop.permute.xlu0 %973 }
 0x1b0   : > { %v993_v24 = vsub.f32 %v913_v50, %v974_v21 }
 0x1b1   : > { %v1004_v25 = vadd.f32 %v1003_v48, %v1002_v13 }
 0x1b2   : > { %v1005_v28 = vsel %vm997_vm5, %v993_v24, 0.0 }
 0x1b3   : > { %v1006_v16 = vadd.f32 %v1005_v28, %v1004_v25 }
 0x1b5   : > { %v1008_v53 = vadd.f32 %v1007_v29, %v1006_v16 }
 0x1dd   : > { %v1202_v17 = vpop.f32.mrf.mxu1 }
 0x1df   : > { %v1204_v27 = vpop.f32.mrf.mxu1 }
 0x1e1   : > { %v1206_v22 = vpop.f32.mrf.mxu1 }
 0x1e3   : > { %v1207_v30 = vpop.f32.mrf.mxu1  ;;  %v1284_v61 = vpop.f32.mrf.mxu0 }
 0x1e5   : > { %v1243_v37 = vpop.f32.mrf.mxu1  ;;  %v1823_v46 = vpop.f32.mrf.mxu0 }
 0x1e7   : > { %v1245_v43 = vpop.f32.mrf.mxu1  ;;  %v1287_v1 = vpop.f32.mrf.mxu0 }
 0x1e9   : > { %v1247_v45 = vpop.f32.mrf.mxu1  ;;  %v1824_v59 = vpop.f32.mrf.mxu0 }
 0x1eb   : > { %v1248_v60 = vpop.f32.mrf.mxu1 }
 0x206   : > { %v978_v54 = vpop.permute.xlu0 %977 }
 0x207   : > { %v995_v32 = vsub.f32 %v915_v6, %v978_v54 }
 0x209   : > { %v1009_v42 = vsel %vm997_vm5, %v995_v32, 0.0 }
 0x20a   : > { %v980_v31 = vpop.permute.xlu1 %979  ;;  %v1010_v0 = vadd.f32 %v1009_v42, %v1008_v53 }
 0x20b   : > { %v996_v40 = vsub.f32 %v916_v33, %v980_v31 }
 0x20d   : > { %v1011_v41 = vsel %vm997_vm5, %v996_v40, 0.0 }
 0x20e   : > { %v1012_v62 = vadd.f32 %v1011_v41, %v1010_v0 }
 0x21b   : > { %v1523_v47 = vpop.permute.xlu1 %1522 }
 0x21d   : > { %v1120_v34 = vpop.permute.xlu0 %1119 }
 0x21e   : > { %v1122_v35 = vsel %vm997_vm5, %v1012_v62, %v1120_v34 }
 0x21f   : > { %v1123_v58 = vpack.c.bf16 %v1122_v35, %v1122_v35 }
 0x221   : > { %1744 = vmatmul.mubr.msk.bf16.vlgmr.msra.gmra.mxu1 %vm679_vm2, %v1123_v58  ;;  %1745 = vmatmul.mubr.msk.bf16.vlgmr.msra.gmra.mxu0 %vm679_vm2, %v1123_v58 }
 0x222   : > { %1826 = vmatpush3.bf16.msra.mxu1 %v1946_v36  ;;  %1833 = vmatprep.mubr.msk.bf16.mxu1 %vm2001_vm1, %v2000_v44 }
 0x223   : > { %1827 = vmatprep.subr.bf16.mxu1 %v2000_v44 }
 0x226   : > { %1828 = vmatpush3.bf16.msra.mxu1 %v1947_v57 }
 0x227   : > { %1829 = vmatprep.subr.bf16.mxu1 %v2000_v44 }
 0x22a   : > { %1830 = vmatpush3.bf16.msra.mxu1 %v1948_v9 }
 0x22b   : > { %1831 = vmatprep.subr.bf16.mxu1 %v2000_v44 }
 0x22e   : > { %1832 = vmatpush3.bf16.msra.mxu1 %v1949_v23 }
 0x231   : > { %1834 = vmatmul.mubr.msk.bf16.vlgmr.msra.gmra.mxu1 %vm679_vm2, %v1123_v58 }
 0x2e1   : > { %v1431_v52 = vpop.f32.mrf.mxu1  ;;  %v1472_v56 = vpop.f32.mrf.mxu0 }
 0x2e2   : > { %v1432_v2 = vadd.f32 %v1431_v52, %v1202_v17  ;;  %v1473_v3 = vadd.f32 %v1472_v56, %v1243_v37 }
 0x2e3   : > { %v1433_v5 = vpop.f32.mrf.mxu1  ;;  %v1474_v12 = vpop.f32.mrf.mxu0 }
 0x2e4   : > { %v1525_v44 = vadd.f32 %v1523_v47, %v1432_v2  ;;  %v1527_v7 = vadd.f32 %v1523_v47, %v1473_v3  ;;  %v1434_v10 = vadd.f32 %v1433_v5, %v1204_v27  ;;  %v1475_v11 = vadd.f32 %v1474_v12, %v1245_v43 }
 0x2e5   : > { %v1435_v4 = vpop.f32.mrf.mxu1  ;;  %v1476_v14 = vpop.f32.mrf.mxu0 }
 0x2e6   : > { %1950 = vtanh.f32 %v1525_v44  ;;  %v1526_v15 = vadd.f32 %v1523_v47, %v1434_v10  ;;  %v1528_v51 = vadd.f32 %v1523_v47, %v1475_v11 }
 0x2e7   : > { %1952 = vtanh.f32 %v1527_v7  ;;  %v1436_v39 = vpop.f32.mrf.mxu1  ;;  %v1477_v8 = vpop.f32.mrf.mxu0 }
 0x2e8   : > { %1954 = vtanh.f32 %v1526_v15 }
 0x2e9   : > { %1956 = vtanh.f32 %v1528_v51 }
 0x2f1   : > { %v1513_v18 = vpop.f32.mrf.mxu1 }
 0x2f2   : > { %v1514_v63 = vadd.f32 %v1513_v18, %v1284_v61 }
 0x2f3   : > { %v1951_v19 = vpop.eup %1950  ;;  %v1835_v20 = vpop.f32.mrf.mxu1 }
 0x2f4   : > { %v1953_v50 = vpop.eup %1952  ;;  %v1539_v13 = vsel %vm2508_vm6, %v1951_v19, %v1525_v44  ;;  %v1529_v21 = vadd.f32 %v1523_v47, %v1514_v63 }
 0x2f5   : > { %v1955_v48 = vpop.eup %1954  ;;  %v1541_v55 = vsel %vm2508_vm6, %v1953_v50, %v1527_v7  ;;  %1544 = vst [vmem:[#allocation2] sm:$0xff] %v1539_v13  ;;  %1549 = vst [vmem:[%s2103_s12] sm:$0xff] %v1539_v13  ;;  %v1516_v24 = vpop.f32.mrf.mxu1 }
 0x2f6   : > { %v1957_v25 = vpop.eup %1956  ;;  %1546 = vst [vmem:[#allocation2 + $0x10] sm:$0xff] %v1541_v55  ;;  %1551 = vst [vmem:[%s2103_s12 + $0x10] sm:$0xff] %v1541_v55  ;;  %v1540_v26 = vsel %vm2508_vm6, %v1955_v48, %v1526_v15  ;;  %1958 = vtanh.f32 %v1529_v21 }
 0x2f7   : > { %1545 = vst [vmem:[#allocation2 + $0x8] sm:$0xff] %v1540_v26  ;;  %1550 = vst [vmem:[%s2103_s12 + $0x8] sm:$0xff] %v1540_v26  ;;  %v1542_v28 = vsel %vm2508_vm6, %v1957_v25, %v1528_v51  ;;  %v1836_v16 = vpop.f32.mrf.mxu1 }
 0x2f8   : > { %1547 = vst [vmem:[#allocation2 + $0x18] sm:$0xff] %v1542_v28  ;;  %1552 = vst [vmem:[%s2103_s12 + $0x18] sm:$0xff] %v1542_v28 }
 0x303   : > { %v1959_v29 = vpop.eup %1958 }
 0x304   : > { %v1543_v53 = vsel %vm2508_vm6, %v1959_v29, %v1529_v21 }
 0x305   : > { %1548 = vst.msk [vmem:[#allocation2 + $0x20] sm:$0xff] %vm679_vm2, %v1543_v53  ;;  %1553 = vst.msk [vmem:[%s2103_s12 + $0x20] sm:$0xff] %vm679_vm2, %v1543_v53 }
 0x306 PF: > { %s17_s28 = sadd.s32 1, %s1998_s28   ;;  %s2556_s21 = sld [smem:[#allocation3_spill]] }
 0x307   : > { %p14_p8 = scmp.ge.s32.totalorder %s17_s28, 6   ;;  %s2557_s22 = sld [smem:[#allocation4_spill]] }
 0x308   : > { %s2558_s24 = smov %s1990_s26  ;;  %s2559_s25 = smov %s1994_s27 }
 0x309   :  { %16 = sbr.rel (!%p14_p8) target bundleno = 3 (0x3), region = 94 }
 0x30c   : > { %s2560_s26 = smov %s2556_s21 }
 0x30d   : > { %s2561_s27 = smov %s2557_s22 }

// kernel: forward.1
= control target key start
LH: loop header
LB: loop body
LE: loop exit
PB: predicated region body
PF: predicated region fallthrough
CT: control target
= control target key end

     0   :  { %s2046_s24 = smov 0   ;;  %s2048_s25 = smov 0   ;;  %s2544_s0 = inlined_call_operand.vmem [shape: f32[2,8,576], index: 0, kind: input, shape index: {}]   ;;  %s2545_s1 = inlined_call_operand.vmem [shape: bf16[576,64], index: 1, kind: input, shape index: {}]   ;;  %s2546_s2 = inlined_call_operand.vmem [shape: bf16[64,576], index: 2, kind: input, shape index: {}]   ;;  %s2547_s3 = inlined_call_operand.vmem [shape: f32[2,8,8,32], index: 3, kind: input, shape index: {}]   ;;  %s2548_s4 = inlined_call_operand.vmem [shape: f32[2,8,8,32], index: 4, kind: input, shape index: {}]   ;;  %s2549_s5 = inlined_call_operand.vmem [shape: bf16[2,8,8], index: 5, kind: input, shape index: {}]   ;;  %s2550_s6 = inlined_call_operand.vmem [shape: f32[2,8,1], index: 6, kind: input, shape index: {}]   ;;  %s2551_s7 = inlined_call_operand.vmem [shape: f32[2,8,576], index: 7, kind: output, shape index: {}]  }
   0x1   :  { %s2050_s26 = smov 0   ;;  %s2052_s27 = smov 0  }
   0x2   :  { %s2054_s28 = smov 0  }
   0x3 LB: > { %s26_s29 = sadd.s32 1, %s1990_s26  ;;  %s29_s30 = sadd.s32 1, %s1994_s27  ;;  %s1998_s28 = sphi %s2054_s28, %s17_s28   ;;  %s1994_s27 = sphi %s2052_s27, %s2561_s27   ;;  %s1990_s26 = sphi %s2050_s26, %s2560_s26   ;;  %s1986_s25 = sphi %s2048_s25, %s2559_s25   ;;  %s1982_s24 = sphi %s2046_s24, %s2558_s24  }
   0x4   : > { %p27_p0 = scmp.ge.s32.totalorder %s26_s29, 2  ;;  %p1672_p1 = scmp.ge.s32.totalorder %s1998_s28, 1 }
   0x5   : > { %p287_p2 = scmp.lt.s32.totalorder %s1998_s28, 5 }
   0x6   : > { %s2563_s29 = smov (%p27_p0, %s26_s29), 0  ;;  %s2565_s30 = smov (!%p27_p0, %s29_s30), %s1994_s27 }
   0x7   : > { %2552 = sst [smem:[#allocation3_spill]] %s2563_s29  ;;  %p288_p3 = pnand %p1672_p1, %p287_p2 }
   0x8   : > { %p31_p4 = scmp.ge.s32.totalorder %s2565_s30, 2  ;;  %p337_p5 = scmp.lt.s32.totalorder (!%p288_p3), %s1986_s25, 1 }
   0x9   : > { %291 = sbr.rel (%p288_p3) target bundleno = 774 (0x306), region = 48  ;;  %p342_p6 = scmp.lt.s32.totalorder (!%p288_p3), %s1982_s24, 1 }
   0xa   : > { %s2567_s30 = smov (%p31_p4, %s2565_s30), 0  ;;  %p1681_p7 = scmp.ne.s32.totalorder (!%p288_p3), %s1982_s24, 0 }
   0xb   : > { %2553 = sst [smem:[#allocation4_spill]] %s2567_s30 }
   0xe   : > { %s2569_s25 = smov (!%p337_p5, %s1986_s25), 1 }
   0xf   : > { %s343_s8 = scalar_select %p342_p6, %s1982_s24, 1 }
  0x10   : > { %s1837_s9 = smul.u32 40, %s2569_s25 }
  0x11   : > { %s1749_s10 = sshll.u32 %s343_s8, 6  ;;  %s1678_s11 = sshll.u32 %s343_s8, 2 }
  0x12   : > { %s341_s14 = scalar_lea.vmem %s2544_s0, %s1837_s9  ;;  %s2088_s17 = scalar_lea.vmem %s2547_s3, %s1749_s10 }
  0x13   : > { %s2093_s20 = scalar_lea.vmem %s2548_s4, %s1749_s10  ;;  %s2098_s23 = scalar_lea.vmem %s2549_s5, %s1678_s11 }
  0x14   : > { %s1679_s25 = sshll.u32 %s343_s8, 3  ;;  %s2103_s12 = scalar_lea.vmem %s2551_s7, %s1837_s9 }
  0x15   : > { %s2108_s16 = scalar_lea.vmem %s2550_s6, %s1679_s25  ;;  %369 = sbr.rel (%p1681_p7) target bundleno = 30 (0x1e), region = 52 }
  0x1a   : > { %v370_v0 = vld [vmem:[%s341_s14] sm:$0xff]  ;;  %v371_v1 = vld [vmem:[%s341_s14 + $0x8] sm:$0xff]  ;;  %v372_v2 = vld [vmem:[%s341_s14 + $0x10] sm:$0xff]  ;;  %vm379_vm0 = vcmask 523264  }
  0x1b   : > { %375 = vst [vmem:[#allocation2] sm:$0xff] %v370_v0  ;;  %376 = vst [vmem:[#allocation2 + $0x8] sm:$0xff] %v371_v1  ;;  %v373_v3 = vld [vmem:[%s341_s14 + $0x18] sm:$0xff]  ;;  %v374_v4 = vld [vmem:[%s341_s14 + $0x20] sm:$0xff] }
  0x1c   : > { %377 = vst [vmem:[#allocation2 + $0x10] sm:$0xff] %v372_v2  ;;  %378 = vst [vmem:[#allocation2 + $0x18] sm:$0xff] %v373_v3 }
  0x1d   : > { %380 = vst.msk [vmem:[#allocation2 + $0x20] sm:$0xff] %vm379_vm0, %v374_v4 }
  0x1e PF: > { %v1886_v5 = vld [vmem:[%s2545_s1 + $0x78] sm:$0xff]   ;;  %v1890_v9 = vld [vmem:[%s2545_s1 + $0x70] sm:$0xff]   ;;  %v1894_v13 = vld [vmem:[%s2545_s1 + $0x68] sm:$0xff]   ;;  %v2000_v44 = vmov 0.0   ;;  %vm2001_vm1 = vmmov 0   ;;  %s2002_s13 = smov 32  }
  0x1f   : > { %v1887_v6 = vld [vmem:[%s2545_s1 + $0xf8] sm:$0xff]   ;;  %1751 = vmatprep.subr.bf16.mxu0 %v1886_v5  ;;  %v1891_v10 = vld [vmem:[%s2545_s1 + $0xf0] sm:$0xff]   ;;  %v1895_v14 = vld [vmem:[%s2545_s1 + $0xe8] sm:$0xff]   ;;  %vm679_vm2 = vcmask 523264   ;;  %vm1153_vm3 = vcmask 1043456   ;;  %vm1149_vm4 = vcmask 64512  }
  0x20   : > { %v1888_v7 = vld [vmem:[%s2545_s1 + $0x38] sm:$0xff]   ;;  %1773 = vmatprep.subr.bf16.mxu1 %v1887_v6  ;;  %v1892_v11 = vld [vmem:[%s2545_s1 + $0x30] sm:$0xff]   ;;  %v1896_v15 = vld [vmem:[%s2545_s1 + $0x28] sm:$0xff]   ;;  %vm997_vm5 = vcmask 261120   ;;  %s1536_s14 = scalar_select %p342_p6, 1, 0 }
  0x21   : > { %v1889_v8 = vld [vmem:[%s2545_s1 + $0xb8] sm:$0xff]   ;;  %1752 = vmatpush3.bf16.msra.mxu0 %v1888_v7  ;;  %v1893_v12 = vld [vmem:[%s2545_s1 + $0xb0] sm:$0xff]   ;;  %v1897_v16 = vld [vmem:[%s2545_s1 + $0xa8] sm:$0xff]  }
  0x22   : > { %1774 = vmatpush3.bf16.msra.mxu1 %v1889_v8  ;;  %1753 = vmatprep.subr.bf16.mxu0 %v1890_v9  ;;  %v1898_v17 = vld [vmem:[%s2545_s1 + $0x60] sm:$0xff]   ;;  %v1902_v21 = vld [vmem:[%s2545_s1 + $0x58] sm:$0xff]   ;;  %v1906_v25 = vld [vmem:[%s2545_s1 + $0x50] sm:$0xff]  }
  0x23   : > { %1775 = vmatprep.subr.bf16.mxu1 %v1891_v10  ;;  %v1899_v18 = vld [vmem:[%s2545_s1 + $0xe0] sm:$0xff]   ;;  %v1903_v22 = vld [vmem:[%s2545_s1 + $0xd8] sm:$0xff]   ;;  %v1907_v26 = vld [vmem:[%s2545_s1 + $0xd0] sm:$0xff]  }
  0x24   : > { %v1900_v19 = vld [vmem:[%s2545_s1 + $0x20] sm:$0xff]   ;;  %v1904_v23 = vld [vmem:[%s2545_s1 + $0x18] sm:$0xff]   ;;  %v1908_v27 = vld [vmem:[%s2545_s1 + $0x10] sm:$0xff]  }
  0x25   : > { %1754 = vmatpush3.bf16.msra.mxu0 %v1892_v11  ;;  %v1901_v20 = vld [vmem:[%s2545_s1 + $0xa0] sm:$0xff]   ;;  %v1905_v24 = vld [vmem:[%s2545_s1 + $0x98] sm:$0xff]   ;;  %v1909_v28 = vld [vmem:[%s2545_s1 + $0x90] sm:$0xff]   ;;  %v2003_v11 = vmov 1966171168  }
  0x26   : > { %1776 = vmatpush3.bf16.msra.mxu1 %v1893_v12  ;;  %1755 = vmatprep.subr.bf16.mxu0 %v1894_v13  ;;  %v1910_v29 = vld [vmem:[%s2545_s1 + $0x48] sm:$0xff]   ;;  %v1914_v33 = vld [vmem:[%s2545_s1 + $0x40] sm:$0xff]   ;;  %v384_v38 = vld [vmem:[#allocation2 + $0x18] sm:$0xff]  ;;  %v806_v12 = vunpack.c.l.s4 %v2003_v11  ;;  %v808_v13 = vlaneseq }
  0x27   : > { %1777 = vmatprep.subr.bf16.mxu1 %v1895_v14  ;;  %v1911_v30 = vld [vmem:[%s2545_s1 + $0xc8] sm:$0xff]   ;;  %v1915_v34 = vld [vmem:[%s2545_s1 + $0xc0] sm:$0xff]   ;;  %v2209_v41 = vpack.c.bf16 %v384_v38, %v384_v38  ;;  %v383_v43 = vld [vmem:[#allocation2 + $0x10] sm:$0xff] }
  0x28   : > { %v1912_v31 = vld [vmem:[%s2545_s1 + $0x8] sm:$0xff]   ;;  %v1916_v35 = vld [vmem:[%s2545_s1] sm:$0xff]   ;;  %v2214_v45 = vpack.c.bf16 %v383_v43, %v383_v43  ;;  %v1918_v46 = vld [vmem:[%s2545_s1 + $0x118] sm:$0xff]  }
  0x29   : > { %1756 = vmatpush3.bf16.msra.mxu0 %v1896_v15  ;;  %v1913_v32 = vld [vmem:[%s2545_s1 + $0x88] sm:$0xff]   ;;  %v1917_v36 = vld [vmem:[%s2545_s1 + $0x80] sm:$0xff]   ;;  %755 = vmatprep.mubr.bf16.mxu1 %v2209_v41  ;;  %v1919_v47 = vld [vmem:[%s2545_s1 + $0x110] sm:$0xff]  }
  0x2a   : > { %1778 = vmatpush3.bf16.msra.mxu1 %v1897_v16  ;;  %1757 = vmatprep.subr.bf16.mxu0 %v1898_v17  ;;  %v382_v37 = vld [vmem:[#allocation2 + $0x8] sm:$0xff]  ;;  %v381_v39 = vld [vmem:[#allocation2] sm:$0xff]  ;;  %v2229_v48 = vld [vmem:[%s2088_s17 + $0x10] sm:$0xff]  ;;  %v807_v17 = vunpack.c.0.s8 %v806_v12 }
  0x2b   : > { %1779 = vmatprep.subr.bf16.mxu1 %v1899_v18  ;;  %v2207_v40 = vpack.c.bf16 %v382_v37, %v382_v37  ;;  %v2211_v42 = vpack.c.bf16 %v381_v39, %v381_v39  ;;  %1034 = vrot.lane.b32.xlu1 %v2229_v48, %s2002_s13  ;;  %v2235_v49 = vld [vmem:[%s2088_s17] sm:$0xff]  ;;  %v2238_v50 = vld [vmem:[%s2088_s17 + $0x18] sm:$0xff]  ;;  %v2243_v51 = vld [vmem:[%s2088_s17 + $0x8] sm:$0xff]  ;;  %v809_v18 = vshrl.u32 %v808_v13, 7 }
  0x2c   : > { %1030 = vrot.lane.b32.xlu0 %v2235_v49, %s2002_s13  ;;  %v1920_v52 = vld [vmem:[%s2545_s1 + $0x108] sm:$0xff]   ;;  %v2255_v54 = vld [vmem:[%s2088_s17 + $0x20] sm:$0xff]  ;;  %v2263_v57 = vld [vmem:[%s2088_s17 + $0x38] sm:$0xff] }
  0x2d   : > { %1758 = vmatpush3.bf16.msra.mxu0 %v1900_v19  ;;  %715 = vmatprep.mubr.bf16.mxu0 %v2207_v40  ;;  %v2249_v53 = vld [vmem:[%s2088_s17 + $0x28] sm:$0xff]  ;;  %v1921_v55 = vld [vmem:[%s2545_s1 + $0x100] sm:$0xff]   ;;  %v2269_v58 = vld [vmem:[%s2088_s17 + $0x30] sm:$0xff]  ;;  %s2004_s17 = smov 96  }
  0x2e   : > { %1780 = vmatpush3.bf16.msra.mxu1 %v1901_v20  ;;  %1759 = vmatprep.subr.bf16.mxu0 %v1902_v21  ;;  %v385_v56 = vld [vmem:[#allocation2 + $0x20] sm:$0xff]  ;;  %v2279_v60 = vld [vmem:[%s2093_s20 + $0x8] sm:$0xff]  ;;  %v2293_v62 = vld [vmem:[%s2093_s20 + $0x18] sm:$0xff]  ;;  %v810_v20 = vsub.s32 %v807_v17, %v809_v18 }
  0x2f   : > { %1781 = vmatprep.subr.bf16.mxu1 %v1903_v22  ;;  %1036 = vrot.lane.b32.xlu1 %v2238_v50, %s2002_s13  ;;  %v2273_v59 = vpack.c.bf16 %v385_v56, %v385_v56  ;;  %v2286_v61 = vld [vmem:[%s2093_s20] sm:$0xff]  ;;  %v2298_v63 = vld [vmem:[%s2093_s20 + $0x10] sm:$0xff]  ;;  %v2310_v1 = vld [vmem:[%s2093_s20 + $0x28] sm:$0xff] }
  0x30   : > { %1032 = vrot.lane.b32.xlu0 %v2243_v51, %s2002_s13  ;;  %v2303_v0 = vld [vmem:[%s2093_s20 + $0x20] sm:$0xff]  ;;  %v2336_v12 = vld [vmem:[%s2093_s20 + $0x38] sm:$0xff] }
  0x31   : > { %1760 = vmatpush3.bf16.msra.mxu0 %v1904_v23 }
  0x32   : > { %1782 = vmatpush3.bf16.msra.mxu1 %v1905_v24  ;;  %1761 = vmatprep.subr.bf16.mxu0 %v1906_v25 }
  0x33   : > { %1783 = vmatprep.subr.bf16.mxu1 %v1907_v26  ;;  %1040 = vrot.lane.b32.xlu1 %v2249_v53, %s2002_s13 }
  0x34   : > { %1038 = vrot.lane.b32.xlu0 %v2255_v54, %s2002_s13 }
  0x35   : > { %1762 = vmatpush3.bf16.msra.mxu0 %v1908_v27  ;;  %v871_v27 = vsub.s32 0, %v809_v18 }
  0x36   : > { %1784 = vmatpush3.bf16.msra.mxu1 %v1909_v28  ;;  %1763 = vmatprep.subr.bf16.mxu0 %v1910_v29 }
  0x37   : > { %1785 = vmatprep.subr.bf16.mxu1 %v1911_v30  ;;  %1044 = vrot.lane.b32.xlu1 %v2263_v57, %s2002_s13 }
  0x38   : > { %1042 = vrot.lane.b32.xlu0 %v2269_v58, %s2002_s13 }
  0x39   : > { %1764 = vmatpush3.bf16.msra.mxu0 %v1912_v31 }
  0x3a   : > { %1786 = vmatpush3.bf16.msra.mxu1 %v1913_v32  ;;  %1765 = vmatprep.subr.bf16.mxu0 %v1914_v33 }
  0x3b   : > { %1787 = vmatprep.subr.bf16.mxu1 %v1915_v34  ;;  %927 = vrot.lane.b32.xlu1 %v2279_v60, %s2002_s13 }
  0x3c   : > { %925 = vrot.lane.b32.xlu0 %v2286_v61, %s2002_s13 }
  0x3d   : > { %1766 = vmatpush3.bf16.msra.mxu0 %v1916_v35 }
  0x3e   : > { %1788 = vmatpush3.bf16.msra.mxu1 %v1917_v36  ;;  %1807 = vmatprep.subr.bf16.mxu0 %v2000_v44 }
  0x3f   : > { %931 = vrot.lane.b32.xlu1 %v2293_v62, %s2002_s13  ;;  %1719 = vmatprep.subr.msk.bf16.mxu1 %vm1153_vm3, %v2207_v40 }
  0x40   : > { %716 = vmatmul.mubr.bf16.vlgmr.msra.gmra.mxu0 %v2211_v42  ;;  %929 = vrot.lane.b32.xlu0 %v2298_v63, %s2002_s13 }
  0x41   : > { %756 = vmatmul.mubr.bf16.vlgmr.msra.gmra.mxu1 %v2214_v45  ;;  %1808 = vmatpush3.bf16.msra.mxu0 %v1918_v46 }
  0x42   : > { %1815 = vmatprep.mubr.msk.bf16.mxu0 %vm2001_vm1, %v2000_v44  ;;  %1809 = vmatprep.subr.bf16.mxu0 %v2000_v44 }
  0x43   : > { %933 = vrot.lane.b32.xlu1 %v2303_v0, %s2002_s13 }
  0x45   : > { %1810 = vmatpush3.bf16.msra.mxu0 %v1919_v47 }
  0x46   : > { %1811 = vmatprep.subr.bf16.mxu0 %v2000_v44 }
  0x47   : > { %935 = vrot.lane.b32.xlu1 %v2310_v1, %s2002_s13 }
  0x49   : > { %1812 = vmatpush3.bf16.msra.mxu0 %v1920_v52 }
  0x4a   : > { %1813 = vmatprep.subr.bf16.mxu0 %v2000_v44 }
  0x4d   : > { %1814 = vmatpush3.bf16.msra.mxu0 %v1921_v55 }
  0x4e   : > { %1819 = vmatprep.subr.bf16.mxu0 %v2000_v44 }
  0x50   : > { %1816 = vmatmul.mubr.msk.bf16.vlgmr.msra.gmra.mxu0 %vm679_vm2, %v2273_v59 }
  0x51   : > { %1821 = vmatprep.mubr.msk.bf16.mxu0 %vm2001_vm1, %v2000_v44 }
  0x9d   : > { %v1035_v8 = vpop.permute.xlu1 %1034 }
  0x9e   : > { %v1031_v29 = vpop.permute.xlu0 %1030 }
  0xa1   : > { %v1037_v16 = vpop.permute.xlu1 %1036 }
  0xa2   : > { %v1033_v47 = vpop.permute.xlu0 %1032 }
  0xa5   : > { %v1041_v22 = vpop.permute.xlu1 %1040 }
  0xa9   : > { %v1045_v34 = vpop.permute.xlu1 %1044 }
 0x100   : > { %v1767_v2 = vpop.f32.mrf.mxu0 }
 0x101   : > { %v1789_v3 = vpop.f32.mrf.mxu1 }
 0x102   : > { %v1768_v4 = vpop.f32.mrf.mxu0 }
 0x103   : > { %v1790_v5 = vpop.f32.mrf.mxu1  ;;  %v1769_v14 = vadd.f32 %v1768_v4, %v1767_v2  ;;  %v928_v2 = vpop.permute.xlu1 %927  ;;  %v2325_v4 = vld [vmem:[%s2093_s20 + $0x30] sm:$0xff] }
 0x104   : > { %v1770_v6 = vpop.f32.mrf.mxu0  ;;  %v1791_v15 = vadd.f32 %v1790_v5, %v1789_v3 }
 0x105   : > { %v1792_v7 = vpop.f32.mrf.mxu1 }
 0x106   : > { %v1771_v9 = vpop.f32.mrf.mxu0  ;;  %v758_v19 = vadd.f32 %v1791_v15, %v1769_v14 }
 0x107   : > { %v1793_v10 = vpop.f32.mrf.mxu1  ;;  %v932_v11 = vpop.permute.xlu1 %931 }
 0x108   : > { %v1039_v10 = vpop.permute.xlu0 %1038 }
 0x110   : > { %v797_v21 = vpop.f32.mrf.mxu0 }
 0x111   : > { %v798_v23 = vadd.f32 %v797_v21, %v758_v19  ;;  %v1043_v19 = vpop.permute.xlu0 %1042 }
 0x112   : > { %v1817_v24 = vpop.f32.mrf.mxu0 }
 0x113   : > { %v804_v25 = vcombine.high %v798_v23, %v798_v23  ;;  %v811_v26 = vrot.slane %v798_v23, %v810_v20 }
 0x114   : > { %v800_v28 = vpop.f32.mrf.mxu0 }
 0x115   : > { %v818_v30 = vrot.slane %v804_v25, %v810_v20  ;;  %v819_v31 = vcombine.high %v811_v26, %v811_v26  ;;  %v827_v32 = vrot.slane %v811_v26, %v810_v20  ;;  %v926_v26 = vpop.permute.xlu0 %925 }
 0x116   : > { %v1818_v33 = vpop.f32.mrf.mxu0 }
 0x117   : > { %v820_v35 = vcombine.high %v818_v30, %v818_v30  ;;  %v841_v36 = vrot.slane %v819_v31, %v810_v20  ;;  %v849_v37 = vcombine.high %v827_v32, %v827_v32  ;;  %v2314_v38 = vrot.slane %v827_v32, %v871_v27  ;;  %v1148_v32 = vld [vmem:[%s2098_s23] sm:$0xf] }
 0x118   : > { %v834_v52 = vrot.slane %v818_v30, %v810_v20  ;;  %v1155_v30 = vsel %vm1153_vm3, %v2211_v42, 0  ;;  %v2005_v31 = vmov 0   ;;  %v1161_v42 = vsel %vm1153_vm3, %v2214_v45, 0  ;;  %v1924_v45 = vld [vmem:[%s2546_s2 + $0x7c] ss:$20 sps:$4 sm:$0xff]  }
 0x119   : > { %v2316_v39 = vrot.slane %v841_v36, %v871_v27  ;;  %v848_v43 = vrot.slane %v820_v35, %v810_v20  ;;  %v1054_v46 = vmul.f32 %v1031_v29, %v2314_v38  ;;  %v2319_v55 = vrot.slane %v849_v37, %v871_v27  ;;  %v934_v20 = vpop.permute.xlu1 %933  ;;  %1200 = vmatprep.mubr.bf16.mxu1 %v2005_v31 }
 0x11a   : > { %v851_v5 = vcombine.high %v841_v36, %v841_v36  ;;  %v2327_v6 = vrot.slane %v834_v52, %v871_v27  ;;  %1183 = vmatpush1.bf16.msra.mxu1 %v1155_v30  ;;  %1884 = vset.pattern.permute.xlu1 %v2005_v31  ;;  %v1166_v37 = vsel %vm1153_vm3, %v2273_v59, 0 }
 0x11b   : > { %1070 = vrot.lane.b32.xlu1 %v1054_v46, %s2004_s17  ;;  %v1055_v56 = vmul.f32 %v1033_v47, %v2316_v39  ;;  %v852_v3 = vcombine.high %v848_v43, %v848_v43  ;;  %v1056_v7 = vmul.f32 %v1035_v8, %v2319_v55  ;;  %v850_v8 = vcombine.high %v834_v52, %v834_v52  ;;  %v1927_v46 = vld [vmem:[%s2546_s2 + $0x84] ss:$20 sps:$4 sm:$0xff]   ;;  %v1930_v47 = vld [vmem:[%s2546_s2 + $0x54] ss:$20 sps:$4 sm:$0xff]  }
 0x11c   : > { %v2338_v13 = vrot.slane %v851_v5, %v871_v27  ;;  %v1058_v14 = vmul.f32 %v1039_v10, %v2327_v6  ;;  %v2345_v17 = vrot.slane %v848_v43, %v871_v27  ;;  %v950_v21 = vmul.f32 %v928_v2, %v2316_v39  ;;  %1721 = vmatprep.subr.msk.bf16.mxu1 %vm1153_vm3, %v2209_v41  ;;  %v1922_v43 = vld [vmem:[%s2546_s2 + $0x78] ss:$20 sps:$4 sm:$0xff]   ;;  %v1933_v2 = vld [vmem:[%s2546_s2 + $0x5c] ss:$20 sps:$4 sm:$0xff]  }
 0x11d   : > { %1072 = vrot.lane.b32.xlu0 %v1055_v56, %s2004_s17  ;;  %v2333_v9 = vrot.slane %v852_v3, %v871_v27  ;;  %v2351_v23 = vrot.slane %v850_v8, %v871_v27  ;;  %v936_v28 = vpop.permute.xlu1 %935  ;;  %v949_v27 = vmul.f32 %v926_v26, %v2314_v38  ;;  %1720 = vmatmul.mubr.msk.bf16.vlgmr.msra.gmra.mxu1 %vm1149_vm4, %v1148_v32  ;;  %v1928_v56 = vld [vmem:[%s2546_s2 + $0x50] ss:$20 sps:$4 sm:$0xff]   ;;  %v1931_v8 = vld [vmem:[%s2546_s2 + $0x58] ss:$20 sps:$4 sm:$0xff]  }
 0x11e   : > { %v1057_v18 = vmul.f32 %v1037_v16, %v2338_v13  ;;  %v1059_v24 = vmul.f32 %v1041_v22, %v2345_v17  ;;  %v952_v25 = vmul.f32 %v932_v11, %v2338_v13  ;;  %v954_v29 = vmul.f32 %v936_v28, %v2345_v17  ;;  %v930_v22 = vpop.permute.xlu0 %929  ;;  %1885 = vset.pattern.permute.xlu0 %v2005_v31  ;;  %v1936_v11 = vld [vmem:[%s2546_s2 + $0x2c] ss:$20 sps:$4 sm:$0xff]  }
 0x11f   : > { %937 = vrot.lane.b32.xlu1 %v2325_v4, %s2002_s13  ;;  %v1061_v15 = vmul.f32 %v1045_v34, %v2333_v9  ;;  %v1060_v16 = vmul.f32 %v1043_v19, %v2351_v23  ;;  %v951_v33 = vmul.f32 %v930_v22, %v2319_v55  ;;  %1241 = vmatprep.mubr.bf16.mxu1 %v2005_v31 }
 0x120   : > { %v953_v40 = vmul.f32 %v934_v20, %v2327_v6  ;;  %1224 = vmatpush1.bf16.msra.mxu1 %v1161_v42  ;;  %v1014_v41 = vmul.f32 %v2314_v38, %v2286_v61  ;;  %v1015_v36 = vmul.f32 %v2316_v39, %v2279_v60  ;;  %1820 = vmatpush3.bf16.msra.mxu0 %v1166_v37  ;;  %v1925_v60 = vld [vmem:[%s2546_s2 + $0x80] ss:$20 sps:$4 sm:$0xff]   ;;  %v1934_v20 = vld [vmem:[%s2546_s2 + $0x28] ss:$20 sps:$4 sm:$0xff]  }
 0x121   : > { %1074 = vrot.lane.b32.xlu0 %v1056_v7, %s2004_s17  ;;  %1405 = vmatprep.subr.bf16.mxu1 %v1924_v45  ;;  %v1016_v10 = vmul.f32 %v2319_v55, %v2298_v63  ;;  %v1939_v63 = vld [vmem:[%s2546_s2 + $0x34] ss:$20 sps:$4 sm:$0xff]   ;;  %v1018_v22 = vmul.f32 %v2327_v6, %v2303_v0  ;;  %v1017_v30 = vmul.f32 %v2338_v13, %v2293_v62 }
 0x122   : > { %1446 = vmatprep.subr.bf16.mxu0 %v1927_v46  ;;  %v1019_v0 = vmul.f32 %v2345_v17, %v2310_v1  ;;  %v1021_v45 = vmul.f32 %v2333_v9, %v2336_v12 }
 0x123   : > { %939 = vrot.lane.b32.xlu1 %v2336_v12, %s2002_s13  ;;  %1822 = vmatmul.mubr.msk.bf16.vlgmr.msra.gmra.mxu0 %vm1149_vm4, %v1148_v32 }
 0x124   : > { %1447 = vmatpush1.bf16.msra.mxu0 %v1925_v60  ;;  %1470 = vmatprep.mubr.bf16.mxu0 %v2005_v31  ;;  %v1020_v60 = vmul.f32 %v2351_v23, %v2325_v4 }
 0x125   : > { %1078 = vrot.lane.b32.xlu0 %v1058_v14, %s2004_s17  ;;  %1722 = vmatmul.mubr.msk.bf16.vlgmr.msra.gmra.mxu1 %vm1149_vm4, %v1148_v32 }
 0x126   : > { %1429 = vmatprep.mubr.bf16.mxu1 %v2005_v31  ;;  %1406 = vmatpush1.bf16.msra.mxu1 %v1922_v43 }
 0x127   : > { %1084 = vrot.lane.b32.xlu1 %v1061_v15, %s2004_s17  ;;  %1407 = vmatprep.subr.bf16.mxu1 %v1930_v47  ;;  %v910_v47 = vmul.f32 %v2316_v39, %v2243_v51  ;;  %v911_v39 = vmul.f32 %v2319_v55, %v2229_v48 }
 0x128   : > { %1448 = vmatprep.subr.bf16.mxu0 %v1933_v2 }
 0x129   : > { %1076 = vrot.lane.b32.xlu0 %v1057_v18, %s2004_s17  ;;  %1449 = vmatpush1.bf16.msra.mxu0 %v1931_v8 }
 0x12a   : > { %1408 = vmatpush1.bf16.msra.mxu1 %v1928_v56  ;;  %1450 = vmatprep.subr.bf16.mxu0 %v1939_v63 }
 0x12b   : > { %967 = vrot.lane.b32.xlu1 %v950_v21, %s2004_s17  ;;  %1409 = vmatprep.subr.bf16.mxu1 %v1936_v11 }
 0x12d   : > { %1080 = vrot.lane.b32.xlu0 %v1059_v24, %s2004_s17 }
 0x12e   : > { %1410 = vmatpush1.bf16.msra.mxu1 %v1934_v20 }
 0x12f   : > { %971 = vrot.lane.b32.xlu1 %v952_v25, %s2004_s17  ;;  %v1942_v25 = vld [vmem:[%s2546_s2 + $0x4] ss:$20 sps:$4 sm:$0xff]  }
 0x130   : > { %1411 = vmatprep.subr.bf16.mxu1 %v1942_v25 }
 0x131   : > { %1082 = vrot.lane.b32.xlu0 %v1060_v16, %s2004_s17  ;;  %v1937_v16 = vld [vmem:[%s2546_s2 + $0x30] ss:$20 sps:$4 sm:$0xff]  }
 0x132   : > { %1451 = vmatpush1.bf16.msra.mxu0 %v1937_v16 }
 0x133   : > { %975 = vrot.lane.b32.xlu1 %v954_v29, %s2004_s17  ;;  %v1945_v29 = vld [vmem:[%s2546_s2 + $0xc] ss:$20 sps:$4 sm:$0xff]  }
 0x134   : > { %1452 = vmatprep.subr.bf16.mxu0 %v1945_v29 }
 0x135   : > { %965 = vrot.lane.b32.xlu0 %v949_v27, %s2004_s17  ;;  %v1940_v27 = vld [vmem:[%s2546_s2] ss:$20 sps:$4 sm:$0xff]  }
 0x136   : > { %1412 = vmatpush1.bf16.msra.mxu1 %v1940_v27 }
 0x137   : > { %1825 = vmatprep.subr.bf16.mxu1 %v2000_v44 }
 0x139   : > { %969 = vrot.lane.b32.xlu0 %v951_v33, %s2004_s17  ;;  %v1943_v33 = vld [vmem:[%s2546_s2 + $0x8] ss:$20 sps:$4 sm:$0xff]  }
 0x13a   : > { %1453 = vmatpush1.bf16.msra.mxu0 %v1943_v33  ;;  %v916_v33 = vmul.f32 %v2333_v9, %v2263_v57  ;;  %v1947_v57 = vld [vmem:[%s2546_s2 + $0x60] ss:$20 sps:$4 sm:$0xff]  }
 0x13d   : > { %973 = vrot.lane.b32.xlu0 %v953_v40, %s2004_s17 }
 0x18d   : > { %v1071_v34 = vpop.permute.xlu1 %1070 }
 0x18e   : > { %v1094_v35 = vadd.f32 %v1071_v34, %v1014_v41 }
 0x18f   : > { %v1073_v61 = vpop.permute.xlu0 %1072 }
 0x190   : > { %v1095_v59 = vadd.f32 %v1073_v61, %v1015_v36  ;;  %v1102_v3 = vsel %vm997_vm5, %v1094_v35, 0.0 }
 0x191   : > { %v938_v52 = vpop.permute.xlu1 %937 }
 0x192   : > { %v1103_v5 = vsel %vm997_vm5, %v1095_v59, 0.0  ;;  %v955_v7 = vmul.f32 %v938_v52, %v2351_v23 }
 0x193   : > { %v1104_v14 = vadd.f32 %v1103_v5, %v1102_v3  ;;  %v1075_v15 = vpop.permute.xlu0 %1074  ;;  %v909_v3 = vmul.f32 %v2314_v38, %v2235_v49 }
 0x194   : > { %v1096_v18 = vadd.f32 %v1075_v15, %v1016_v10  ;;  %977 = vrot.lane.b32.xlu0 %v955_v7, %s2004_s17  ;;  %v912_v15 = vmul.f32 %v2338_v13, %v2238_v50  ;;  %v913_v50 = vmul.f32 %v2327_v6, %v2255_v54  ;;  %v915_v6 = vmul.f32 %v2351_v23, %v2269_v58  ;;  %v1949_v23 = vld [vmem:[%s2546_s2 + $0x10] ss:$20 sps:$4 sm:$0xff]  }
 0x195   : > { %v940_v19 = vpop.permute.xlu1 %939 }
 0x196   : > { %v1105_v21 = vsel %vm997_vm5, %v1096_v18, 0.0  ;;  %v956_v24 = vmul.f32 %v940_v19, %v2333_v9  ;;  %v914_v19 = vmul.f32 %v2345_v17, %v2249_v53  ;;  %v1948_v9 = vld [vmem:[%s2546_s2 + $0x38] ss:$20 sps:$4 sm:$0xff]  }
 0x197   : > { %v1106_v26 = vadd.f32 %v1105_v21, %v1104_v14  ;;  %v1079_v28 = vpop.permute.xlu0 %1078 }
 0x198   : > { %979 = vrot.lane.b32.xlu1 %v956_v24, %s2004_s17  ;;  %v1098_v40 = vadd.f32 %v1079_v28, %v1018_v22 }
 0x199   : > { %v1085_v31 = vpop.permute.xlu1 %1084 }
 0x19a   : > { %v1109_v35 = vsel %vm997_vm5, %v1098_v40, 0.0  ;;  %v1101_v59 = vadd.f32 %v1085_v31, %v1021_v45 }
 0x19b   : > { %v1077_v32 = vpop.permute.xlu0 %1076 }
 0x19c   : > { %v1097_v42 = vadd.f32 %v1077_v32, %v1017_v30  ;;  %v1115_v10 = vsel %vm997_vm5, %v1101_v59, 0.0 }
 0x19d   : > { %v968_v37 = vpop.permute.xlu1 %967 }
 0x19e   : > { %v1107_v41 = vsel %vm997_vm5, %v1097_v42, 0.0  ;;  %v990_v56 = vsub.f32 %v910_v47, %v968_v37 }
 0x19f   : > { %v1108_v62 = vadd.f32 %v1107_v41, %v1106_v26  ;;  %v1081_v34 = vpop.permute.xlu0 %1080  ;;  %v1519_v26 = vld [vmem:[%s2108_s16] sm:$0xff] }
 0x1a0   : > { %v1099_v36 = vadd.f32 %v1081_v34, %v1019_v0  ;;  %v999_v14 = vsel %vm997_vm5, %v990_v56, 0.0  ;;  %1522 = vperm.xlu1 %1884, %v1519_v26  }
 0x1a1   : > { %v1110_v43 = vadd.f32 %v1109_v35, %v1108_v62  ;;  %v972_v5 = vpop.permute.xlu1 %971 }
 0x1a2   : > { %v1111_v61 = vsel %vm997_vm5, %v1099_v36, 0.0  ;;  %v992_v38 = vsub.f32 %v912_v15, %v972_v5  ;;  %v1946_v36 = vld [vmem:[%s2546_s2 + $0x88] ss:$20 sps:$4 sm:$0xff]  }
 0x1a3   : > { %v1112_v46 = vadd.f32 %v1111_v61, %v1110_v43  ;;  %v1083_v1 = vpop.permute.xlu0 %1082 }
 0x1a4   : > { %v1100_v52 = vadd.f32 %v1083_v1, %v1020_v60  ;;  %v1003_v48 = vsel %vm997_vm5, %v992_v38, 0.0 }
 0x1a5   : > { %v976_v63 = vpop.permute.xlu1 %975 }
 0x1a6   : > { %v1113_v2 = vsel %vm997_vm5, %v1100_v52, 0.0  ;;  %v994_v55 = vsub.f32 %v914_v19, %v976_v63 }
 0x1a7   : > { %v1114_v12 = vadd.f32 %v1113_v2, %v1112_v46  ;;  %v966_v7 = vpop.permute.xlu0 %965 }
 0x1a8   : > { %v989_v11 = vsub.f32 %v909_v3, %v966_v7  ;;  %v1007_v29 = vsel %vm997_vm5, %v994_v55, 0.0 }
 0x1a9   : > { %v1116_v4 = vadd.f32 %v1115_v10, %v1114_v12 }
 0x1aa   : > { %v998_v51 = vsel %vm997_vm5, %v989_v11, 0.0 }
 0x1ab   : > { %v1000_v8 = vadd.f32 %v999_v14, %v998_v51  ;;  %v970_v49 = vpop.permute.xlu0 %969  ;;  %1119 = vrot.lane.b32.xlu0 %v1116_v4, %s2002_s13 }
 0x1ac   : > { %v991_v18 = vsub.f32 %v911_v39, %v970_v49  ;;  %v1537_v49 = vstv %s1536_s14 }
 0x1ad   : > { %vm2508_vm6 = vcmp.eq.s32.totalorder %v1537_v49, 1 }
 0x1ae   : > { %v1001_v20 = vsel %vm997_vm5, %v991_v18, 0.0 }
 0x1af   : > { %v1002_v13 = vadd.f32 %v1001_v20, %v1000_v8  ;;  %v974_v21 = vpop.permute.xlu0 %973 }
 0x1b0   : > { %v993_v24 = vsub.f32 %v913_v50, %v974_v21 }
 0x1b1   : > { %v1004_v25 = vadd.f32 %v1003_v48, %v1002_v13 }
 0x1b2   : > { %v1005_v28 = vsel %vm997_vm5, %v993_v24, 0.0 }
 0x1b3   : > { %v1006_v16 = vadd.f32 %v1005_v28, %v1004_v25 }
 0x1b5   : > { %v1008_v53 = vadd.f32 %v1007_v29, %v1006_v16 }
 0x1dd   : > { %v1202_v17 = vpop.f32.mrf.mxu1 }
 0x1df   : > { %v1204_v27 = vpop.f32.mrf.mxu1 }
 0x1e1   : > { %v1206_v22 = vpop.f32.mrf.mxu1 }
 0x1e3   : > { %v1207_v30 = vpop.f32.mrf.mxu1  ;;  %v1284_v61 = vpop.f32.mrf.mxu0 }
 0x1e5   : > { %v1243_v37 = vpop.f32.mrf.mxu1  ;;  %v1823_v46 = vpop.f32.mrf.mxu0 }
 0x1e7   : > { %v1245_v43 = vpop.f32.mrf.mxu1  ;;  %v1287_v1 = vpop.f32.mrf.mxu0 }
 0x1e9   : > { %v1247_v45 = vpop.f32.mrf.mxu1  ;;  %v1824_v59 = vpop.f32.mrf.mxu0 }
 0x1eb   : > { %v1248_v60 = vpop.f32.mrf.mxu1 }
 0x206   : > { %v978_v54 = vpop.permute.xlu0 %977 }
 0x207   : > { %v995_v32 = vsub.f32 %v915_v6, %v978_v54 }
 0x209   : > { %v1009_v42 = vsel %vm997_vm5, %v995_v32, 0.0 }
 0x20a   : > { %v980_v31 = vpop.permute.xlu1 %979  ;;  %v1010_v0 = vadd.f32 %v1009_v42, %v1008_v53 }
 0x20b   : > { %v996_v40 = vsub.f32 %v916_v33, %v980_v31 }
 0x20d   : > { %v1011_v41 = vsel %vm997_vm5, %v996_v40, 0.0 }
 0x20e   : > { %v1012_v62 = vadd.f32 %v1011_v41, %v1010_v0 }
 0x21b   : > { %v1523_v47 = vpop.permute.xlu1 %1522 }
 0x21d   : > { %v1120_v34 = vpop.permute.xlu0 %1119 }
 0x21e   : > { %v1122_v35 = vsel %vm997_vm5, %v1012_v62, %v1120_v34 }
 0x21f   : > { %v1123_v58 = vpack.c.bf16 %v1122_v35, %v1122_v35 }
 0x221   : > { %1744 = vmatmul.mubr.msk.bf16.vlgmr.msra.gmra.mxu1 %vm679_vm2, %v1123_v58  ;;  %1745 = vmatmul.mubr.msk.bf16.vlgmr.msra.gmra.mxu0 %vm679_vm2, %v1123_v58 }
 0x222   : > { %1826 = vmatpush3.bf16.msra.mxu1 %v1946_v36  ;;  %1833 = vmatprep.mubr.msk.bf16.mxu1 %vm2001_vm1, %v2000_v44 }
 0x223   : > { %1827 = vmatprep.subr.bf16.mxu1 %v2000_v44 }
 0x226   : > { %1828 = vmatpush3.bf16.msra.mxu1 %v1947_v57 }
 0x227   : > { %1829 = vmatprep.subr.bf16.mxu1 %v2000_v44 }
 0x22a   : > { %1830 = vmatpush3.bf16.msra.mxu1 %v1948_v9 }
 0x22b   : > { %1831 = vmatprep.subr.bf16.mxu1 %v2000_v44 }
 0x22e   : > { %1832 = vmatpush3.bf16.msra.mxu1 %v1949_v23 }
 0x231   : > { %1834 = vmatmul.mubr.msk.bf16.vlgmr.msra.gmra.mxu1 %vm679_vm2, %v1123_v58 }
 0x2e1   : > { %v1431_v52 = vpop.f32.mrf.mxu1  ;;  %v1472_v56 = vpop.f32.mrf.mxu0 }
 0x2e2   : > { %v1432_v2 = vadd.f32 %v1431_v52, %v1202_v17  ;;  %v1473_v3 = vadd.f32 %v1472_v56, %v1243_v37 }
 0x2e3   : > { %v1433_v5 = vpop.f32.mrf.mxu1  ;;  %v1474_v12 = vpop.f32.mrf.mxu0 }
 0x2e4   : > { %v1525_v44 = vadd.f32 %v1523_v47, %v1432_v2  ;;  %v1527_v7 = vadd.f32 %v1523_v47, %v1473_v3  ;;  %v1434_v10 = vadd.f32 %v1433_v5, %v1204_v27  ;;  %v1475_v11 = vadd.f32 %v1474_v12, %v1245_v43 }
 0x2e5   : > { %v1435_v4 = vpop.f32.mrf.mxu1  ;;  %v1476_v14 = vpop.f32.mrf.mxu0 }
 0x2e6   : > { %1950 = vtanh.f32 %v1525_v44  ;;  %v1526_v15 = vadd.f32 %v1523_v47, %v1434_v10  ;;  %v1528_v51 = vadd.f32 %v1523_v47, %v1475_v11 }
 0x2e7   : > { %1952 = vtanh.f32 %v1527_v7  ;;  %v1436_v39 = vpop.f32.mrf.mxu1  ;;  %v1477_v8 = vpop.f32.mrf.mxu0 }
 0x2e8   : > { %1954 = vtanh.f32 %v1526_v15 }
 0x2e9   : > { %1956 = vtanh.f32 %v1528_v51 }
 0x2f1   : > { %v1513_v18 = vpop.f32.mrf.mxu1 }
 0x2f2   : > { %v1514_v63 = vadd.f32 %v1513_v18, %v1284_v61 }
 0x2f3   : > { %v1951_v19 = vpop.eup %1950  ;;  %v1835_v20 = vpop.f32.mrf.mxu1 }
 0x2f4   : > { %v1953_v50 = vpop.eup %1952  ;;  %v1539_v13 = vsel %vm2508_vm6, %v1951_v19, %v1525_v44  ;;  %v1529_v21 = vadd.f32 %v1523_v47, %v1514_v63 }
 0x2f5   : > { %v1955_v48 = vpop.eup %1954  ;;  %v1541_v55 = vsel %vm2508_vm6, %v1953_v50, %v1527_v7  ;;  %1544 = vst [vmem:[#allocation2] sm:$0xff] %v1539_v13  ;;  %1549 = vst [vmem:[%s2103_s12] sm:$0xff] %v1539_v13  ;;  %v1516_v24 = vpop.f32.mrf.mxu1 }
 0x2f6   : > { %v1957_v25 = vpop.eup %1956  ;;  %1546 = vst [vmem:[#allocation2 + $0x10] sm:$0xff] %v1541_v55  ;;  %1551 = vst [vmem:[%s2103_s12 + $0x10] sm:$0xff] %v1541_v55  ;;  %v1540_v26 = vsel %vm2508_vm6, %v1955_v48, %v1526_v15  ;;  %1958 = vtanh.f32 %v1529_v21 }
 0x2f7   : > { %1545 = vst [vmem:[#allocation2 + $0x8] sm:$0xff] %v1540_v26  ;;  %1550 = vst [vmem:[%s2103_s12 + $0x8] sm:$0xff] %v1540_v26  ;;  %v1542_v28 = vsel %vm2508_vm6, %v1957_v25, %v1528_v51  ;;  %v1836_v16 = vpop.f32.mrf.mxu1 }
 0x2f8   : > { %1547 = vst [vmem:[#allocation2 + $0x18] sm:$0xff] %v1542_v28  ;;  %1552 = vst [vmem:[%s2103_s12 + $0x18] sm:$0xff] %v1542_v28 }
 0x303   : > { %v1959_v29 = vpop.eup %1958 }
 0x304   : > { %v1543_v53 = vsel %vm2508_vm6, %v1959_v29, %v1529_v21 }
 0x305   : > { %1548 = vst.msk [vmem:[#allocation2 + $0x20] sm:$0xff] %vm679_vm2, %v1543_v53  ;;  %1553 = vst.msk [vmem:[%s2103_s12 + $0x20] sm:$0xff] %vm679_vm2, %v1543_v53 }
 0x306 PF: > { %s17_s28 = sadd.s32 1, %s1998_s28   ;;  %s2556_s21 = sld [smem:[#allocation3_spill]] }
 0x307   : > { %p14_p8 = scmp.ge.s32.totalorder %s17_s28, 6   ;;  %s2557_s22 = sld [smem:[#allocation4_spill]] }
 0x308   : > { %s2558_s24 = smov %s1990_s26  ;;  %s2559_s25 = smov %s1994_s27 }
 0x309   :  { %16 = sbr.rel (!%p14_p8) target bundleno = 3 (0x3), region = 94 }
 0x30c   : > { %s2560_s26 = smov %s2556_s21 }
 0x30d   : > { %s2561_s27 = smov %s2557_s22 }

</bundles_post_ra>
